<compile_context>
chip_gen: v7x
topology: tpu7x:2x2x1
jax: 0.10.0
libtpu: 0.0.40
codegen_flags: <defaults>
</compile_context>

<pallas_src>
import functools
import math

import jax
import jax.numpy as jnp
from jax import lax
from jax.experimental import pallas as pl
from jax.experimental.pallas import tpu as pltpu


def _patch_merge_kernel(x_ref, gamma_ref, beta_ref, w_ref, o_ref, *, eps):
    """Fused unfold + LayerNorm + Linear on one (row-block, out-channel-block).

    x_ref     : (tr, kh, out_w, dk)  input dtype, dk = kw*C_in
    gamma_ref : (kh, dk) f32  LayerNorm weight, (ki, kj, c) order
    beta_ref  : (kh, dk) f32  LayerNorm bias,   (ki, kj, c) order
    w_ref     : (kh, dk, tn)  Linear weight rows, (ki, kj, c) order
    o_ref     : (tm, tn)      tm = tr * out_w
    """
    tr, kh, ow, dk = x_ref.shape
    tm = tr * ow
    tn = w_ref.shape[-1]
    d = kh * dk                                    # full merged feature dim

    # Pass 1: fused sum / sum-of-squares, one kh-slab (f32) live at a time.
    total = jnp.zeros((tr, ow, 1), jnp.float32)
    sumsq = jnp.zeros((tr, ow, 1), jnp.float32)
    for i in range(kh):
        p = x_ref[:, i].astype(jnp.float32)        # (tr, ow, dk)
        total = total + p.sum(axis=-1, keepdims=True)
        sumsq = sumsq + (p * p).sum(axis=-1, keepdims=True)
    mean = total * (1.0 / d)
    var = jnp.maximum(sumsq * (1.0 / d) - mean * mean, 0.0)   # biased var, like torch LN
    inv = lax.rsqrt(var + eps)

    # Pass 2: normalize slab-at-a-time, cast, matmul-accumulate into one f32 acc.
    acc = jnp.zeros((tm, tn), jnp.float32)
    for i in range(kh):
        p = x_ref[:, i].astype(jnp.float32)
        g = gamma_ref[i:i + 1, :].reshape(1, 1, dk)
        b = beta_ref[i:i + 1, :].reshape(1, 1, dk)
        y = ((p - mean) * inv * g + b).astype(w_ref.dtype)     # bf16 MXU path for bf16 w
        acc += jnp.dot(y.reshape(tm, dk), w_ref[i],
                       preferred_element_type=jnp.float32)
    o_ref[...] = acc.astype(o_ref.dtype)


def _vmem_capacity_bytes():
    try:
        cap = int(getattr(pltpu.get_tpu_info(), "vmem_capacity_bytes", 0))
        if cap > 0:
            return cap
    except Exception:
        pass
    return 64 << 20          # conservative default (v7x per-core VMEM)


def _choose_n_split(n_pad, D, w_itemsize, max_block_bytes=3 << 20, max_splits=8):
    """Split out_channels into blocks so the resident weight block stays small."""
    if n_pad % 128:                       # keep the whole (lane-padded) weight resident
        return 1
    best = 1
    for nb in range(1, max_splits + 1):
        if n_pad % nb:
            continue
        tn = n_pad // nb
        if tn % 128:
            continue
        best = nb
        if D * tn * w_itemsize <= max_block_bytes:
            break
    return best


def _choose_row_tile(R, out_w, per_tok_bytes, token_budget_bytes):
    """Pick tr (merged rows per grid step).  tr*out_w is kept 8-aligned (or the block
    covers every row); prefer divisors of R (no ragged last block) and an even number
    of grid steps (v7x megacore), with the largest tile inside the VMEM budget."""
    max_tok = max(8, token_budget_bytes // max(per_tok_bytes, 1))
    target_tok = int(min(2048, max_tok))
    target_tr = max(1, min(R, target_tok // max(out_w, 1)))

    align = 8 // math.gcd(out_w, 8)       # smallest tr with (tr*out_w) % 8 == 0
    divs = [d for d in range(1, R + 1)
            if R % d == 0 and (d * out_w) % 8 == 0 and d <= target_tr]
    if divs:
        tr = max(divs)
        even = [d for d in divs if (R // d) % 2 == 0]
        if even and 2 * max(even) >= tr:  # even grid at <=2x smaller tile
            tr = max(even)
        if tr == R and R > 1:             # avoid a single giant step when splittable
            alt = [d for d in divs if d < R and d * out_w >= 256]
            if alt:
                tr = max(alt)
        return tr
    if R <= align:
        return R                          # tiny row count: one block covering all rows
    # Ragged path: aligned tr, last block partially out of bounds (writes are clipped).
    return max(align, (target_tr // align) * align)


def patch_merging_forward(x, input_size, gamma, beta, w_t,
                          kernel_size=(2, 2), stride=None, eps=1e-5):
    """Pallas implementation of PatchMerging.forward.

    Args:
      x: (B, H*W, C_in)
      input_size: (H, W)
      gamma, beta: LayerNorm params, shape (kh*kw*C_in,), in nn.Unfold feature order.
      w_t: Linear weight pre-transposed to (kh*kw*C_in, out_channels), unfold order.
    Returns:
      (out, (out_h, out_w)) with out: (B, out_h*out_w, out_channels), dtype of x.
    """
    B, L, C = x.shape
    H, W = input_size
    assert L == H * W, "input feature has wrong size"
    if stride is None:
        stride = kernel_size
    kh, kw = kernel_size
    sh, sw = stride
    assert (kh, kw) == (sh, sw), "fused kernel assumes kernel_size == stride"

    # Adaptive 'corner' padding (bottom/right), NHWC.
    xhw = x.reshape(B, H, W, C)
    pad_h = (-H) % sh
    pad_w = (-W) % sw
    if pad_h or pad_w:
        # TODO(synk): fold the ragged bottom/right edge into the kernel (masked tail
        # slab) to avoid this extra HBM read+write of the whole input for odd H/W.
        xhw = jnp.pad(xhw, ((0, 0), (0, pad_h), (0, pad_w), (0, 0)))
    Hp, Wp = H + pad_h, W + pad_w
    out_h, out_w = Hp // sh, Wp // sw

    D = kh * kw * C
    dk = kw * C
    R = B * out_h
    M = R * out_w

    # Pure reshape (no data movement): x2[r, ki, ow, kj*C + c] = pixel (sh*oh+ki, sw*ow+kj, c).
    x2 = xhw.reshape(R, kh, out_w, dk)

    # Permute parameters ONCE (tiny) from nn.Unfold feature order f = c*(kh*kw)+ki*kw+kj
    # to the kernel's natural (ki, kj, c) order.
    kidx = jnp.arange(kh).reshape(kh, 1, 1)
    kjdx = jnp.arange(kw).reshape(1, kw, 1)
    cidx = jnp.arange(C).reshape(1, 1, C)
    f_unf = (cidx * (kh * kw) + kidx * kw + kjdx).reshape(-1)
    gamma_k = gamma[f_unf].astype(jnp.float32).reshape(kh, dk)
    beta_k = beta[f_unf].astype(jnp.float32).reshape(kh, dk)
    w_k = w_t[f_unf, :]                                        # (D, Cout)

    # bf16 activations + f32 weight -> use the bf16 MXU path (f32 accumulate kept).
    if x.dtype == jnp.bfloat16 and w_k.dtype == jnp.float32:
        w_k = w_k.astype(jnp.bfloat16)

    Cout = w_k.shape[1]
    n_pad = Cout if Cout >= 128 else 128                       # lane-dense output stores
    if n_pad != Cout:
        w_k = jnp.pad(w_k, ((0, 0), (0, n_pad - Cout)))
    w_itemsize = jnp.dtype(w_k.dtype).itemsize
    w_k = w_k.reshape(kh, dk, n_pad)

    # Out-channel tiling for large weights (keeps the resident weight block small).
    n_blocks = _choose_n_split(n_pad, D, w_itemsize)
    tn = n_pad // n_blocks
    w_block_bytes = kh * dk * tn * w_itemsize
    weight_resident = w_block_bytes * (1 if n_blocks == 1 else 2)
    params_resident = 4 * kh * dk * 4                          # gamma+beta, worst case

    out_dtype = x.dtype
    x_itemsize = jnp.dtype(x2.dtype).itemsize
    o_itemsize = jnp.dtype(out_dtype).itemsize

    vmem_cap = _vmem_capacity_bytes()
    token_budget = max((vmem_cap // 2) - weight_resident - params_resident, 2 << 20)
    per_tok = (2 * D * x_itemsize        # double-buffered input block
               + 2 * tn * o_itemsize     # double-buffered output block
               + 4 * dk * 4              # live f32 slab + normalized slab
               + tn * 4                  # f32 accumulator
               + 64)
    tr = _choose_row_tile(R, out_w, per_tok, token_budget)
    tm = tr * out_w
    grid_rows = pl.cdiv(R, tr)

    need = tm * per_tok + weight_resident + params_resident + (2 << 20)
    vmem_limit = int(min(max(need + (4 << 20), 32 << 20), (vmem_cap * 3) // 4))

    kernel = functools.partial(_patch_merge_kernel, eps=eps)
    out_shape = jax.ShapeDtypeStruct((M, n_pad), out_dtype)

    def _call(single_buffer_consts):
        def const_spec(shape, index_map):
            if single_buffer_consts:
                return pl.BlockSpec(shape, index_map, pipeline_mode=pl.Buffered(1))
            return pl.BlockSpec(shape, index_map)

        if n_blocks == 1:
            w_spec = const_spec((kh, dk, tn), lambda i, j: (0, 0, 0))
        else:
            w_spec = pl.BlockSpec((kh, dk, tn), lambda i, j: (0, 0, j))

        grid_spec = pltpu.PrefetchScalarGridSpec(
            num_scalar_prefetch=0,
            grid=(grid_rows, n_blocks),       # N innermost: x block index constant
            in_specs=[                        # across it -> no x re-fetch
                pl.BlockSpec((tr, kh, out_w, dk), lambda i, j: (i, 0, 0, 0)),
                const_spec((kh, dk), lambda i, j: (0, 0)),
                const_spec((kh, dk), lambda i, j: (0, 0)),
                w_spec,
            ],
            out_specs=pl.BlockSpec((tm, tn), lambda i, j: (i, j)),
        )
        return pl.pallas_call(
            kernel,
            out_shape=out_shape,
            grid_spec=grid_spec,
            compiler_params=pltpu.CompilerParams(
                dimension_semantics=("parallel", "arbitrary"),
                vmem_limit_bytes=vmem_limit,
            ),
        )(x2, gamma_k, beta_k, w_k)

    try:
        out = _call(True)
    except Exception:
        # pipeline_mode / Buffered(1) unsupported on this JAX version: double-buffer.
        out = _call(False)

    out = out.reshape(B, out_h * out_w, n_pad)
    if n_pad != Cout:
        out = out[..., :Cout]
    return out, (out_h, out_w)


if __name__ == "__main__":
    # Small deterministic example: in_channels=4, out_channels=8, H=W=16, B=2.
    B, H, W, Cin, Cout = 2, 16, 16, 4, 8
    kh = kw = 2
    D = kh * kw * Cin  # sample_dim = 16

    key = jax.random.PRNGKey(0)
    kx, kw_ = jax.random.split(key, 2)
    x = jax.random.normal(kx, (B, H * W, Cin), dtype=jnp.float32)

    # PyTorch-default-like params (LayerNorm gamma=1, beta=0; Linear weight random,
    # bias=False), weight stored pre-transposed as (D, Cout), unfold feature order.
    gamma = jnp.ones((D,), dtype=jnp.float32)
    beta = jnp.zeros((D,), dtype=jnp.float32)
    w_t = jax.random.normal(kw_, (D, Cout), dtype=jnp.float32) * 0.1

    out, out_size = patch_merging_forward(x, (H, W), gamma, beta, w_t)
    out = jax.block_until_ready(out)
    assert out.shape == (B, (H // 2) * (W // 2), Cout), out.shape
    assert out_size == (H // 2, W // 2)

    # Pure-JAX reference in nn.Unfold feature order (checks the param permutation too).
    out_h, out_w = out_size
    xg = x.reshape(B, out_h, kh, out_w, kw, Cin)
    ref_p = jnp.transpose(xg, (0, 1, 3, 5, 2, 4)).reshape(B * out_h * out_w, D)
    mu = ref_p.mean(-1, keepdims=True)
    var = ((ref_p - mu) ** 2).mean(-1, keepdims=True)
    ref = ((ref_p - mu) / jnp.sqrt(var + 1e-5) * gamma + beta) @ w_t
    ref = ref.reshape(B, -1, Cout)
    err = float(jnp.max(jnp.abs(out - ref)))
    assert jnp.allclose(out, ref, atol=1e-4, rtol=1e-4), err

    # bf16 activations + bf16 weight (bf16 MXU path, f32 LayerNorm), loose tolerance.
    out_bf, _ = patch_merging_forward(
        x.astype(jnp.bfloat16), (H, W), gamma, beta, w_t.astype(jnp.bfloat16))
    out_bf = jax.block_until_ready(out_bf)
    err_bf = float(jnp.max(jnp.abs(out_bf.astype(jnp.float32) - ref)))
    assert jnp.allclose(out_bf.astype(jnp.float32), ref, atol=7.5e-2, rtol=7.5e-2), err_bf

    print("KERNEL_OK")
</pallas_src>

<mosaic_0001>
module attributes {stable_mosaic.version = 11 : i64} {
  func.func @_patch_merge_kernel(%arg0: i32, %arg1: i32, %arg2: memref<8x2x8x8xf32, #tpu.memory_space<vmem>>, %arg3: memref<2x8xf32, #tpu.memory_space<vmem>>, %arg4: memref<2x8xf32, #tpu.memory_space<vmem>>, %arg5: memref<2x8x128xf32, #tpu.memory_space<vmem>>, %arg6: memref<64x128xf32, #tpu.memory_space<vmem>>) attributes {dimension_semantics = [#tpu.dimension_semantics<parallel>, #tpu.dimension_semantics<arbitrary>], iteration_bounds = array<i64: 2, 1>, scalar_prefetch = 0 : i64, scratch_operands = 0 : i64, tpu.core_type = #tpu.core_type<tc>, window_params = [{transform_indices = @transform_0, window_bounds = array<i64: 8, 2, 8, 8>}, {pipeline_mode = #tpu.pipeline_mode<synchronous>, transform_indices = @transform_1, window_bounds = array<i64: 2, 8>}, {pipeline_mode = #tpu.pipeline_mode<synchronous>, transform_indices = @transform_2, window_bounds = array<i64: 2, 8>}, {pipeline_mode = #tpu.pipeline_mode<synchronous>, transform_indices = @transform_3, window_bounds = array<i64: 2, 8, 128>}, {transform_indices = @transform_4, window_bounds = array<i64: 64, 128>}]} {
    %cst = arith.constant 0.000000e+00 : f32
    %0 = vector.broadcast %cst : f32 to vector<8x8x1xf32>
    %cst_0 = arith.constant 0.000000e+00 : f32
    %1 = vector.broadcast %cst_0 : f32 to vector<8x8x1xf32>
    %c0 = arith.constant 0 : index
    %c0_1 = arith.constant 0 : index
    %c0_2 = arith.constant 0 : index
    %c0_3 = arith.constant 0 : index
    %2 = vector.load %arg2[%c0, %c0_1, %c0_2, %c0_3] : memref<8x2x8x8xf32, #tpu.memory_space<vmem>>, vector<8x1x8x8xf32>
    %3 = vector.shape_cast %2 : vector<8x1x8x8xf32> to vector<8x8x8xf32>
    %cst_4 = arith.constant dense<0.000000e+00> : vector<8x8xf32>
    %4 = vector.multi_reduction <add>, %3, %cst_4 [2] : vector<8x8x8xf32> to vector<8x8xf32>
    %5 = vector.shape_cast %4 : vector<8x8xf32> to vector<8x8x1xf32>
    %6 = arith.addf %0, %5 : vector<8x8x1xf32>
    %7 = arith.mulf %3, %3 : vector<8x8x8xf32>
    %cst_5 = arith.constant dense<0.000000e+00> : vector<8x8xf32>
    %8 = vector.multi_reduction <add>, %7, %cst_5 [2] : vector<8x8x8xf32> to vector<8x8xf32>
    %9 = vector.shape_cast %8 : vector<8x8xf32> to vector<8x8x1xf32>
    %10 = arith.addf %1, %9 : vector<8x8x1xf32>
    %c0_6 = arith.constant 0 : index
    %c1 = arith.constant 1 : index
    %c0_7 = arith.constant 0 : index
    %c0_8 = arith.constant 0 : index
    %11 = vector.load %arg2[%c0_6, %c1, %c0_7, %c0_8] : memref<8x2x8x8xf32, #tpu.memory_space<vmem>>, vector<8x1x8x8xf32>
    %12 = vector.shape_cast %11 : vector<8x1x8x8xf32> to vector<8x8x8xf32>
    %cst_9 = arith.constant dense<0.000000e+00> : vector<8x8xf32>
    %13 = vector.multi_reduction <add>, %12, %cst_9 [2] : vector<8x8x8xf32> to vector<8x8xf32>
    %14 = vector.shape_cast %13 : vector<8x8xf32> to vector<8x8x1xf32>
    %15 = arith.addf %6, %14 : vector<8x8x1xf32>
    %16 = arith.mulf %12, %12 : vector<8x8x8xf32>
    %cst_10 = arith.constant dense<0.000000e+00> : vector<8x8xf32>
    %17 = vector.multi_reduction <add>, %16, %cst_10 [2] : vector<8x8x8xf32> to vector<8x8xf32>
    %18 = vector.shape_cast %17 : vector<8x8xf32> to vector<8x8x1xf32>
    %19 = arith.addf %10, %18 : vector<8x8x1xf32>
    %cst_11 = arith.constant 6.250000e-02 : f32
    %20 = vector.broadcast %cst_11 : f32 to vector<8x8x1xf32>
    %21 = arith.mulf %15, %20 : vector<8x8x1xf32>
    %cst_12 = arith.constant 6.250000e-02 : f32
    %22 = vector.broadcast %cst_12 : f32 to vector<8x8x1xf32>
    %23 = arith.mulf %19, %22 : vector<8x8x1xf32>
    %24 = arith.mulf %21, %21 : vector<8x8x1xf32>
    %25 = arith.subf %23, %24 : vector<8x8x1xf32>
    %cst_13 = arith.constant 0.000000e+00 : f32
    %26 = vector.broadcast %cst_13 : f32 to vector<8x8x1xf32>
    %27 = arith.maximumf %25, %26 : vector<8x8x1xf32>
    %cst_14 = arith.constant 9.99999974E-6 : f32
    %28 = vector.broadcast %cst_14 : f32 to vector<8x8x1xf32>
    %29 = arith.addf %27, %28 : vector<8x8x1xf32>
    %30 = math.rsqrt %29 : vector<8x8x1xf32>
    %cst_15 = arith.constant 0.000000e+00 : f32
    %31 = vector.broadcast %cst_15 : f32 to vector<64x128xf32>
    %c0_16 = arith.constant 0 : index
    %c0_17 = arith.constant 0 : index
    %c0_18 = arith.constant 0 : index
    %c0_19 = arith.constant 0 : index
    %32 = vector.load %arg2[%c0_16, %c0_17, %c0_18, %c0_19] : memref<8x2x8x8xf32, #tpu.memory_space<vmem>>, vector<8x1x8x8xf32>
    %33 = vector.shape_cast %32 : vector<8x1x8x8xf32> to vector<8x8x8xf32>
    %c0_20 = arith.constant 0 : index
    %c0_21 = arith.constant 0 : index
    %34 = vector.load %arg3[%c0_20, %c0_21] : memref<2x8xf32, #tpu.memory_space<vmem>>, vector<1x8xf32>
    %35 = vector.shape_cast %34 : vector<1x8xf32> to vector<1x1x8xf32>
    %c0_22 = arith.constant 0 : index
    %c0_23 = arith.constant 0 : index
    %36 = vector.load %arg4[%c0_22, %c0_23] : memref<2x8xf32, #tpu.memory_space<vmem>>, vector<1x8xf32>
    %37 = vector.shape_cast %36 : vector<1x8xf32> to vector<1x1x8xf32>
    %38 = vector.broadcast %21 : vector<8x8x1xf32> to vector<8x8x8xf32>
    %39 = arith.subf %33, %38 : vector<8x8x8xf32>
    %40 = vector.broadcast %30 : vector<8x8x1xf32> to vector<8x8x8xf32>
    %41 = arith.mulf %39, %40 : vector<8x8x8xf32>
    %42 = vector.broadcast %35 : vector<1x1x8xf32> to vector<8x8x8xf32>
    %43 = arith.mulf %41, %42 : vector<8x8x8xf32>
    %44 = vector.broadcast %37 : vector<1x1x8xf32> to vector<8x8x8xf32>
    %45 = arith.addf %43, %44 : vector<8x8x8xf32>
    %46 = vector.shape_cast %45 : vector<8x8x8xf32> to vector<64x8xf32>
    %c0_24 = arith.constant 0 : index
    %c0_25 = arith.constant 0 : index
    %c0_26 = arith.constant 0 : index
    %47 = vector.load %arg5[%c0_24, %c0_25, %c0_26] : memref<2x8x128xf32, #tpu.memory_space<vmem>>, vector<1x8x128xf32>
    %48 = vector.shape_cast %47 : vector<1x8x128xf32> to vector<8x128xf32>
    %cst_27 = arith.constant dense<0.000000e+00> : vector<64x128xf32>
    %49 = tpu.matmul %46, %48, %cst_27 {dimension_numbers = #tpu.dot_dimension_numbers<[1], [0], [0], [1], [0, 0, 1, 1], [], []>} : vector<64x8xf32>, vector<8x128xf32>, vector<64x128xf32> -> vector<64x128xf32>
    %50 = arith.addf %31, %49 : vector<64x128xf32>
    %c0_28 = arith.constant 0 : index
    %c1_29 = arith.constant 1 : index
    %c0_30 = arith.constant 0 : index
    %c0_31 = arith.constant 0 : index
    %51 = vector.load %arg2[%c0_28, %c1_29, %c0_30, %c0_31] : memref<8x2x8x8xf32, #tpu.memory_space<vmem>>, vector<8x1x8x8xf32>
    %52 = vector.shape_cast %51 : vector<8x1x8x8xf32> to vector<8x8x8xf32>
    %c1_32 = arith.constant 1 : index
    %c0_33 = arith.constant 0 : index
    %53 = vector.load %arg3[%c1_32, %c0_33] : memref<2x8xf32, #tpu.memory_space<vmem>>, vector<1x8xf32>
    %54 = vector.shape_cast %53 : vector<1x8xf32> to vector<1x1x8xf32>
    %c1_34 = arith.constant 1 : index
    %c0_35 = arith.constant 0 : index
    %55 = vector.load %arg4[%c1_34, %c0_35] : memref<2x8xf32, #tpu.memory_space<vmem>>, vector<1x8xf32>
    %56 = vector.shape_cast %55 : vector<1x8xf32> to vector<1x1x8xf32>
    %57 = vector.broadcast %21 : vector<8x8x1xf32> to vector<8x8x8xf32>
    %58 = arith.subf %52, %57 : vector<8x8x8xf32>
    %59 = vector.broadcast %30 : vector<8x8x1xf32> to vector<8x8x8xf32>
    %60 = arith.mulf %58, %59 : vector<8x8x8xf32>
    %61 = vector.broadcast %54 : vector<1x1x8xf32> to vector<8x8x8xf32>
    %62 = arith.mulf %60, %61 : vector<8x8x8xf32>
    %63 = vector.broadcast %56 : vector<1x1x8xf32> to vector<8x8x8xf32>
    %64 = arith.addf %62, %63 : vector<8x8x8xf32>
    %65 = vector.shape_cast %64 : vector<8x8x8xf32> to vector<64x8xf32>
    %c1_36 = arith.constant 1 : index
    %c0_37 = arith.constant 0 : index
    %c0_38 = arith.constant 0 : index
    %66 = vector.load %arg5[%c1_36, %c0_37, %c0_38] : memref<2x8x128xf32, #tpu.memory_space<vmem>>, vector<1x8x128xf32>
    %67 = vector.shape_cast %66 : vector<1x8x128xf32> to vector<8x128xf32>
    %cst_39 = arith.constant dense<0.000000e+00> : vector<64x128xf32>
    %68 = tpu.matmul %65, %67, %cst_39 {dimension_numbers = #tpu.dot_dimension_numbers<[1], [0], [0], [1], [0, 0, 1, 1], [], []>} : vector<64x8xf32>, vector<8x128xf32>, vector<64x128xf32> -> vector<64x128xf32>
    %69 = arith.addf %50, %68 : vector<64x128xf32>
    %c0_40 = arith.constant 0 : index
    %c0_41 = arith.constant 0 : index
    %70 = vector.load %arg6[%c0_40, %c0_41] : memref<64x128xf32, #tpu.memory_space<vmem>>, vector<64x128xf32>
    tpu.vector_store %arg6[%c0_40, %c0_41], %69 {strides = array<i32>} : memref<64x128xf32, #tpu.memory_space<vmem>>, vector<64x128xf32>,
    return
  }
  func.func @transform_0(%arg0: i32, %arg1: i32) -> (i32, i32, i32, i32) {
    %c0_i32 = arith.constant 0 : i32
    %c0_i32_0 = arith.constant 0 : i32
    %c0_i32_1 = arith.constant 0 : i32
    %c0_i32_2 = arith.constant 0 : i32
    return %arg0, %c0_i32, %c0_i32_0, %c0_i32_1 : i32, i32, i32, i32
  }
  func.func @transform_1(%arg0: i32, %arg1: i32) -> (i32, i32) {
    %c0_i32 = arith.constant 0 : i32
    %c0_i32_0 = arith.constant 0 : i32
    %c0_i32_1 = arith.constant 0 : i32
    return %c0_i32, %c0_i32_0 : i32, i32
  }
  func.func @transform_2(%arg0: i32, %arg1: i32) -> (i32, i32) {
    %c0_i32 = arith.constant 0 : i32
    %c0_i32_0 = arith.constant 0 : i32
    %c0_i32_1 = arith.constant 0 : i32
    return %c0_i32, %c0_i32_0 : i32, i32
  }
  func.func @transform_3(%arg0: i32, %arg1: i32) -> (i32, i32, i32) {
    %c0_i32 = arith.constant 0 : i32
    %c0_i32_0 = arith.constant 0 : i32
    %c0_i32_1 = arith.constant 0 : i32
    %c0_i32_2 = arith.constant 0 : i32
    return %c0_i32, %c0_i32_0, %c0_i32_1 : i32, i32, i32
  }
  func.func @transform_4(%arg0: i32, %arg1: i32) -> (i32, i32) {
    %c0_i32 = arith.constant 0 : i32
    return %arg0, %arg1 : i32, i32
  }
}

module attributes {stable_mosaic.version = 11 : i64} {
  func.func @_patch_merge_kernel(%arg0: i32, %arg1: i32, %arg2: memref<8x2x8x8xf32, #tpu.memory_space<vmem>>, %arg3: memref<2x8xf32, #tpu.memory_space<vmem>>, %arg4: memref<2x8xf32, #tpu.memory_space<vmem>>, %arg5: memref<2x8x128xf32, #tpu.memory_space<vmem>>, %arg6: memref<64x128xf32, #tpu.memory_space<vmem>>) attributes {dimension_semantics = [#tpu.dimension_semantics<parallel>, #tpu.dimension_semantics<arbitrary>], iteration_bounds = array<i64: 2, 1>, scalar_prefetch = 0 : i64, scratch_operands = 0 : i64, tpu.core_type = #tpu.core_type<tc>, window_params = [{transform_indices = @transform_0, window_bounds = array<i64: 8, 2, 8, 8>}, {pipeline_mode = #tpu.pipeline_mode<synchronous>, transform_indices = @transform_1, window_bounds = array<i64: 2, 8>}, {pipeline_mode = #tpu.pipeline_mode<synchronous>, transform_indices = @transform_2, window_bounds = array<i64: 2, 8>}, {pipeline_mode = #tpu.pipeline_mode<synchronous>, transform_indices = @transform_3, window_bounds = array<i64: 2, 8, 128>}, {transform_indices = @transform_4, window_bounds = array<i64: 64, 128>}]} {
    %cst = arith.constant 0.000000e+00 : f32
    %0 = vector.broadcast %cst : f32 to vector<8x8x1xf32>
    %cst_0 = arith.constant 0.000000e+00 : f32
    %1 = vector.broadcast %cst_0 : f32 to vector<8x8x1xf32>
    %c0 = arith.constant 0 : index
    %c0_1 = arith.constant 0 : index
    %c0_2 = arith.constant 0 : index
    %c0_3 = arith.constant 0 : index
    %2 = vector.load %arg2[%c0, %c0_1, %c0_2, %c0_3] : memref<8x2x8x8xf32, #tpu.memory_space<vmem>>, vector<8x1x8x8xf32>
    %3 = vector.shape_cast %2 : vector<8x1x8x8xf32> to vector<8x8x8xf32>
    %cst_4 = arith.constant dense<0.000000e+00> : vector<8x8xf32>
    %4 = vector.multi_reduction <add>, %3, %cst_4 [2] : vector<8x8x8xf32> to vector<8x8xf32>
    %5 = vector.shape_cast %4 : vector<8x8xf32> to vector<8x8x1xf32>
    %6 = arith.addf %0, %5 : vector<8x8x1xf32>
    %7 = arith.mulf %3, %3 : vector<8x8x8xf32>
    %cst_5 = arith.constant dense<0.000000e+00> : vector<8x8xf32>
    %8 = vector.multi_reduction <add>, %7, %cst_5 [2] : vector<8x8x8xf32> to vector<8x8xf32>
    %9 = vector.shape_cast %8 : vector<8x8xf32> to vector<8x8x1xf32>
    %10 = arith.addf %1, %9 : vector<8x8x1xf32>
    %c0_6 = arith.constant 0 : index
    %c1 = arith.constant 1 : index
    %c0_7 = arith.constant 0 : index
    %c0_8 = arith.constant 0 : index
    %11 = vector.load %arg2[%c0_6, %c1, %c0_7, %c0_8] : memref<8x2x8x8xf32, #tpu.memory_space<vmem>>, vector<8x1x8x8xf32>
    %12 = vector.shape_cast %11 : vector<8x1x8x8xf32> to vector<8x8x8xf32>
    %cst_9 = arith.constant dense<0.000000e+00> : vector<8x8xf32>
    %13 = vector.multi_reduction <add>, %12, %cst_9 [2] : vector<8x8x8xf32> to vector<8x8xf32>
    %14 = vector.shape_cast %13 : vector<8x8xf32> to vector<8x8x1xf32>
    %15 = arith.addf %6, %14 : vector<8x8x1xf32>
    %16 = arith.mulf %12, %12 : vector<8x8x8xf32>
    %cst_10 = arith.constant dense<0.000000e+00> : vector<8x8xf32>
    %17 = vector.multi_reduction <add>, %16, %cst_10 [2] : vector<8x8x8xf32> to vector<8x8xf32>
    %18 = vector.shape_cast %17 : vector<8x8xf32> to vector<8x8x1xf32>
    %19 = arith.addf %10, %18 : vector<8x8x1xf32>
    %cst_11 = arith.constant 6.250000e-02 : f32
    %20 = vector.broadcast %cst_11 : f32 to vector<8x8x1xf32>
    %21 = arith.mulf %15, %20 : vector<8x8x1xf32>
    %cst_12 = arith.constant 6.250000e-02 : f32
    %22 = vector.broadcast %cst_12 : f32 to vector<8x8x1xf32>
    %23 = arith.mulf %19, %22 : vector<8x8x1xf32>
    %24 = arith.mulf %21, %21 : vector<8x8x1xf32>
    %25 = arith.subf %23, %24 : vector<8x8x1xf32>
    %cst_13 = arith.constant 0.000000e+00 : f32
    %26 = vector.broadcast %cst_13 : f32 to vector<8x8x1xf32>
    %27 = arith.maximumf %25, %26 : vector<8x8x1xf32>
    %cst_14 = arith.constant 9.99999974E-6 : f32
    %28 = vector.broadcast %cst_14 : f32 to vector<8x8x1xf32>
    %29 = arith.addf %27, %28 : vector<8x8x1xf32>
    %30 = math.rsqrt %29 : vector<8x8x1xf32>
    %cst_15 = arith.constant 0.000000e+00 : f32
    %31 = vector.broadcast %cst_15 : f32 to vector<64x128xf32>
    %c0_16 = arith.constant 0 : index
    %c0_17 = arith.constant 0 : index
    %c0_18 = arith.constant 0 : index
    %c0_19 = arith.constant 0 : index
    %32 = vector.load %arg2[%c0_16, %c0_17, %c0_18, %c0_19] : memref<8x2x8x8xf32, #tpu.memory_space<vmem>>, vector<8x1x8x8xf32>
    %33 = vector.shape_cast %32 : vector<8x1x8x8xf32> to vector<8x8x8xf32>
    %c0_20 = arith.constant 0 : index
    %c0_21 = arith.constant 0 : index
    %34 = vector.load %arg3[%c0_20, %c0_21] : memref<2x8xf32, #tpu.memory_space<vmem>>, vector<1x8xf32>
    %35 = vector.shape_cast %34 : vector<1x8xf32> to vector<1x1x8xf32>
    %c0_22 = arith.constant 0 : index
    %c0_23 = arith.constant 0 : index
    %36 = vector.load %arg4[%c0_22, %c0_23] : memref<2x8xf32, #tpu.memory_space<vmem>>, vector<1x8xf32>
    %37 = vector.shape_cast %36 : vector<1x8xf32> to vector<1x1x8xf32>
    %38 = vector.broadcast %21 : vector<8x8x1xf32> to vector<8x8x8xf32>
    %39 = arith.subf %33, %38 : vector<8x8x8xf32>
    %40 = vector.broadcast %30 : vector<8x8x1xf32> to vector<8x8x8xf32>
    %41 = arith.mulf %39, %40 : vector<8x8x8xf32>
    %42 = vector.broadcast %35 : vector<1x1x8xf32> to vector<8x8x8xf32>
    %43 = arith.mulf %41, %42 : vector<8x8x8xf32>
    %44 = vector.broadcast %37 : vector<1x1x8xf32> to vector<8x8x8xf32>
    %45 = arith.addf %43, %44 : vector<8x8x8xf32>
    %46 = vector.shape_cast %45 : vector<8x8x8xf32> to vector<64x8xf32>
    %c0_24 = arith.constant 0 : index
    %c0_25 = arith.constant 0 : index
    %c0_26 = arith.constant 0 : index
    %47 = vector.load %arg5[%c0_24, %c0_25, %c0_26] : memref<2x8x128xf32, #tpu.memory_space<vmem>>, vector<1x8x128xf32>
    %48 = vector.shape_cast %47 : vector<1x8x128xf32> to vector<8x128xf32>
    %cst_27 = arith.constant dense<0.000000e+00> : vector<64x128xf32>
    %49 = tpu.matmul %46, %48, %cst_27 {dimension_numbers = #tpu.dot_dimension_numbers<[1], [0], [0], [1], [0, 0, 1, 1], [], []>} : vector<64x8xf32>, vector<8x128xf32>, vector<64x128xf32> -> vector<64x128xf32>
    %50 = arith.addf %31, %49 : vector<64x128xf32>
    %c0_28 = arith.constant 0 : index
    %c1_29 = arith.constant 1 : index
    %c0_30 = arith.constant 0 : index
    %c0_31 = arith.constant 0 : index
    %51 = vector.load %arg2[%c0_28, %c1_29, %c0_30, %c0_31] : memref<8x2x8x8xf32, #tpu.memory_space<vmem>>, vector<8x1x8x8xf32>
    %52 = vector.shape_cast %51 : vector<8x1x8x8xf32> to vector<8x8x8xf32>
    %c1_32 = arith.constant 1 : index
    %c0_33 = arith.constant 0 : index
    %53 = vector.load %arg3[%c1_32, %c0_33] : memref<2x8xf32, #tpu.memory_space<vmem>>, vector<1x8xf32>
    %54 = vector.shape_cast %53 : vector<1x8xf32> to vector<1x1x8xf32>
    %c1_34 = arith.constant 1 : index
    %c0_35 = arith.constant 0 : index
    %55 = vector.load %arg4[%c1_34, %c0_35] : memref<2x8xf32, #tpu.memory_space<vmem>>, vector<1x8xf32>
    %56 = vector.shape_cast %55 : vector<1x8xf32> to vector<1x1x8xf32>
    %57 = vector.broadcast %21 : vector<8x8x1xf32> to vector<8x8x8xf32>
    %58 = arith.subf %52, %57 : vector<8x8x8xf32>
    %59 = vector.broadcast %30 : vector<8x8x1xf32> to vector<8x8x8xf32>
    %60 = arith.mulf %58, %59 : vector<8x8x8xf32>
    %61 = vector.broadcast %54 : vector<1x1x8xf32> to vector<8x8x8xf32>
    %62 = arith.mulf %60, %61 : vector<8x8x8xf32>
    %63 = vector.broadcast %56 : vector<1x1x8xf32> to vector<8x8x8xf32>
    %64 = arith.addf %62, %63 : vector<8x8x8xf32>
    %65 = vector.shape_cast %64 : vector<8x8x8xf32> to vector<64x8xf32>
    %c1_36 = arith.constant 1 : index
    %c0_37 = arith.constant 0 : index
    %c0_38 = arith.constant 0 : index
    %66 = vector.load %arg5[%c1_36, %c0_37, %c0_38] : memref<2x8x128xf32, #tpu.memory_space<vmem>>, vector<1x8x128xf32>
    %67 = vector.shape_cast %66 : vector<1x8x128xf32> to vector<8x128xf32>
    %cst_39 = arith.constant dense<0.000000e+00> : vector<64x128xf32>
    %68 = tpu.matmul %65, %67, %cst_39 {dimension_numbers = #tpu.dot_dimension_numbers<[1], [0], [0], [1], [0, 0, 1, 1], [], []>} : vector<64x8xf32>, vector<8x128xf32>, vector<64x128xf32> -> vector<64x128xf32>
    %69 = arith.addf %50, %68 : vector<64x128xf32>
    %c0_40 = arith.constant 0 : index
    %c0_41 = arith.constant 0 : index
    %70 = vector.load %arg6[%c0_40, %c0_41] : memref<64x128xf32, #tpu.memory_space<vmem>>, vector<64x128xf32>
    tpu.vector_store %arg6[%c0_40, %c0_41], %69 {strides = array<i32>} : memref<64x128xf32, #tpu.memory_space<vmem>>, vector<64x128xf32>,
    return
  }
  func.func @transform_0(%arg0: i32, %arg1: i32) -> (i32, i32, i32, i32) {
    %c0_i32 = arith.constant 0 : i32
    %c0_i32_0 = arith.constant 0 : i32
    %c0_i32_1 = arith.constant 0 : i32
    %c0_i32_2 = arith.constant 0 : i32
    return %arg0, %c0_i32, %c0_i32_0, %c0_i32_1 : i32, i32, i32, i32
  }
  func.func @transform_1(%arg0: i32, %arg1: i32) -> (i32, i32) {
    %c0_i32 = arith.constant 0 : i32
    %c0_i32_0 = arith.constant 0 : i32
    %c0_i32_1 = arith.constant 0 : i32
    return %c0_i32, %c0_i32_0 : i32, i32
  }
  func.func @transform_2(%arg0: i32, %arg1: i32) -> (i32, i32) {
    %c0_i32 = arith.constant 0 : i32
    %c0_i32_0 = arith.constant 0 : i32
    %c0_i32_1 = arith.constant 0 : i32
    return %c0_i32, %c0_i32_0 : i32, i32
  }
  func.func @transform_3(%arg0: i32, %arg1: i32) -> (i32, i32, i32) {
    %c0_i32 = arith.constant 0 : i32
    %c0_i32_0 = arith.constant 0 : i32
    %c0_i32_1 = arith.constant 0 : i32
    %c0_i32_2 = arith.constant 0 : i32
    return %c0_i32, %c0_i32_0, %c0_i32_1 : i32, i32, i32
  }
  func.func @transform_4(%arg0: i32, %arg1: i32) -> (i32, i32) {
    %c0_i32 = arith.constant 0 : i32
    return %arg0, %arg1 : i32, i32
  }
}

</mosaic_0001>

<bundles_post_ra>
// kernel: tpu_custom_call.1
= control target key start
LH: loop header
LB: loop body
LE: loop exit
PB: predicated region body
PF: predicated region fallthrough
CT: control target
= control target key end

     0   :  { %9 = vsyncpa [#allocation3], 0  ;;  %s1516_s0 = inlined_call_operand.vmem [shape: f32[16,2,8,8], index: 0, kind: input, shape index: {}]   ;;  %s1517_s1 = inlined_call_operand.vmem [shape: f32[2,8], index: 1, kind: input, shape index: {}]   ;;  %s1518_s2 = inlined_call_operand.vmem [shape: f32[2,8], index: 2, kind: input, shape index: {}]   ;;  %s1519_s3 = inlined_call_operand.vmem [shape: f32[2,8,128], index: 3, kind: input, shape index: {}]   ;;  %s1520_s4 = inlined_call_operand.hbm [shape: f32[128,128], index: 4, kind: output, shape index: {}]  }
   0x1   :  { %11 = vsyncpa [#allocation3 + $0x1], 0  ;;  %s1154_s15 = smov 0   ;;  %s1156_s16 = smov 0  }
   0x2   :  { %s1158_s17 = smov 0   ;;  %s1160_s18 = smov 0  }
   0x3   :  { %s1162_s19 = smov 0   ;;  %s1164_s20 = smov 0  }
   0x4 LB: > { %s874_s21 = sadd.s32 4294967295, %s1124_s20   ;;  %s875_s22 = sadd.s32 4294967294, %s1124_s20   ;;  %s1124_s20 = sphi %s1164_s20, %s17_s20   ;;  %s1120_s19 = sphi %s1162_s19, %s1527_s19   ;;  %s1116_s18 = sphi %s1160_s18, %s1526_s18   ;;  %s1112_s17 = sphi %s1158_s17, %s1525_s17   ;;  %s1108_s16 = sphi %s1156_s16, %s1524_s16   ;;  %s1104_s15 = sphi %s1154_s15, %s1523_s15  }
   0x5   : > { %s29_s23 = sadd.s32 1, %s1120_s19  ;;  %s127_s24 = sadd.s32 1, %s1112_s17 }
   0x6   : > { %p31_p0 = scmp.ge.s32.totalorder %s29_s23, 2  ;;  %p137_p1 = scmp.ne.s32.totalorder %s1112_s17, %s1108_s16 }
   0x7   : > { %p138_p2 = scmp.eq.s32.totalorder %s874_s21, 1  ;;  %p143_p3 = scmp.ne.s32.totalorder %s1108_s16, %s1104_s15 }
   0x8   : > { %s1529_s23 = smov (%p31_p0, %s29_s23), 0  ;;  %p144_p5 = scmp.eq.s32.totalorder %s875_s22, 1 }
   0x9   : > { %p1194_p4 = por %p138_p2, %p137_p1  ;;  %s122_s26 = ssub.s32 %s1120_s19, %s1529_s23 }
   0xa   : > { %p878_p6 = scmp.ge.s32.totalorder %s1124_s20, 1  ;;  %p125_p7 = scmp.eq.s32.totalorder %s122_s26, 0 }
   0xb   : > { %p1201_p8 = por %p144_p5, %p143_p3  ;;  %p181_p9 = scmp.lt.s32.totalorder %s1124_s20, 3 }
   0xc   : > { %s1207_s28 = scalar_select %p125_p7, %s1112_s17, %s127_s24  }
   0xd   : > { %p182_p10 = pnand %p878_p6, %p181_p9 }
   0xe   : > { %s880_s29 = sshll.u32 (!%p182_p10), %s1116_s18, 3  ;;  %vm224_vm0 = vcmask (!%p182_p10), 64512   ;;  %v895_v58 = vld [vmem:[%s1519_s3 + $0x8] sm:$0xff] (!%p182_p10)  ;;  %v476_v59 = vld [vmem:[%s1519_s3] sm:$0xff] (!%p182_p10)  ;;  %s1126_s13 = smov (!%p182_p10), [#allocation2]  }
   0xf   : > { %185 = sbr.rel (%p182_p10) target bundleno = 486 (0x1e6), region = 36  ;;  %p209_p11 = scmp.lt.s32.totalorder (!%p182_p10), %s880_s29, 15  ;;  %937 = vmatprep.subr.mxu1 (!%p182_p10), %v895_v58  ;;  %951 = vmatprep.subr.mxu0 (!%p182_p10), %v476_v59 }
  0x10   : > { %938 = vmatpush3.msra.mxu1 (!%p182_p10), %v895_v58  ;;  %952 = vmatpush3.msra.mxu0 (!%p182_p10), %v476_v59  ;;  %s1050_s14 = sshll.u32 (!%p182_p10), %s1126_s13, 4  ;;  %s1051_s14 = int_to_ptr.vmem [resolvable:$false] %s1050_s14 }
  0x11   : > { %s1052_s21 = scalar_lea.vmem (!%p182_p10), %s1051_s14, 2048 }
  0x16   : > { %s1531_s29 = smov (!%p209_p11, %s880_s29), 15 }
  0x17   : > { %s917_s30 = sshll.u32 %s1531_s29, 4 }
  0x18   : > { %s1213_s7 = scalar_lea.vmem %s1516_s0, %s917_s30  ;;  %s205_s30 = sand.u32 1, %s1108_s16  }
  0x19   : > { %v1216_v0 = vld [vmem:[%s1213_s7 + $0x10] sm:$0xff]  ;;  %v1219_v1 = vld [vmem:[%s1213_s7] sm:$0xff]  ;;  %v1222_v2 = vld [vmem:[%s1213_s7 + $0x18] sm:$0xff]  ;;  %s879_s5 = sshll.u32 %s205_s30, 6 }
  0x1a   : > { %v228_v3 = vsel %vm224_vm0, %v1216_v0, 0.0  ;;  %v225_v4 = vsel %vm224_vm0, %v1219_v1, 0.0  ;;  %v1229_v5 = vld [vmem:[%s1213_s7 + $0x8] sm:$0xff]  ;;  %v309_v6 = vsel %vm224_vm0, %v1222_v2, 0.0  ;;  %v257_v9 = vmul.f32 %v1219_v1, %v1219_v1  ;;  %v1251_v17 = vld [vmem:[%s1213_s7 + $0x20] sm:$0xff]  ;;  %v1258_v20 = vld [vmem:[%s1213_s7 + $0x38] sm:$0xff] }
  0x1b   : > { %229 = vadd.xlane.f32.xlu1 %v228_v3  ;;  %226 = vadd.xlane.f32.xlu0 %v225_v4  ;;  %v306_v7 = vsel %vm224_vm0, %v1229_v5, 0.0  ;;  %v338_v8 = vmul.f32 %v1229_v5, %v1229_v5  ;;  %v339_v12 = vmul.f32 %v1222_v2, %v1222_v2  ;;  %v258_v13 = vmul.f32 %v1216_v0, %v1216_v0  ;;  %v1248_v16 = vld [vmem:[%s1213_s7 + $0x28] sm:$0xff]  ;;  %v1261_v21 = vld [vmem:[%s1213_s7 + $0x30] sm:$0xff]  ;;  %v1283_v33 = vld [vmem:[%s1213_s7 + $0x40] sm:$0xff]  ;;  %s207_s6 = scalar_lea.vmem [#allocation2], %s879_s5 }
  0x1c   : > { %v265_v11 = vsel %vm224_vm0, %v257_v9, 0.0  ;;  %v312_v18 = vsel %vm224_vm0, %v1248_v16, 0.0  ;;  %v231_v19 = vsel %vm224_vm0, %v1251_v17, 0.0  ;;  %v315_v22 = vsel %vm224_vm0, %v1258_v20, 0.0  ;;  %v1280_v32 = vld [vmem:[%s1213_s7 + $0x48] sm:$0xff]  ;;  %v1290_v36 = vld [vmem:[%s1213_s7 + $0x58] sm:$0xff] }
  0x1d   : > { %v346_v10 = vsel %vm224_vm0, %v338_v8, 0.0  ;;  %v349_v14 = vsel %vm224_vm0, %v339_v12, 0.0  ;;  %v268_v15 = vsel %vm224_vm0, %v258_v13, 0.0  ;;  %v234_v23 = vsel %vm224_vm0, %v1261_v21, 0.0  ;;  %v1293_v37 = vld [vmem:[%s1213_s7 + $0x50] sm:$0xff]  ;;  %v1312_v48 = vld [vmem:[%s1213_s7 + $0x68] sm:$0xff] }
  0x1e   : > { %v340_v24 = vmul.f32 %v1248_v16, %v1248_v16  ;;  %v259_v25 = vmul.f32 %v1251_v17, %v1251_v17  ;;  %v341_v28 = vmul.f32 %v1258_v20, %v1258_v20  ;;  %v260_v29 = vmul.f32 %v1261_v21, %v1261_v21  ;;  %v1315_v49 = vld [vmem:[%s1213_s7 + $0x60] sm:$0xff]  ;;  %v1322_v52 = vld [vmem:[%s1213_s7 + $0x78] sm:$0xff]  ;;  %v1325_v53 = vld [vmem:[%s1213_s7 + $0x70] sm:$0xff]  ;;  %s918_s7 = sshll.u32 %s1116_s18, 10  ;;  %s802_s8 = sshll.u32 %s207_s6, 4  ;;  %s1466_s8 = int_to_ptr.vmem [resolvable:$true] %s802_s8 }
  0x1f   : > { %310 = vadd.xlane.f32.xlu1 %v309_v6  ;;  %307 = vadd.xlane.f32.xlu0 %v306_v7  ;;  %v318_v34 = vsel %vm224_vm0, %v1280_v32, 0.0  ;;  %v237_v35 = vsel %vm224_vm0, %v1283_v33, 0.0  ;;  %v321_v38 = vsel %vm224_vm0, %v1290_v36, 0.0  ;;  %v240_v39 = vsel %vm224_vm0, %v1293_v37, 0.0  ;;  %s1464_s11 = scalar_lea.hbm %s1520_s4, %s918_s7  ;;  %s1470_s18 = scalar_lea.sflag [#allocation3], %s205_s30 }
  0x20   : > { %v352_v26 = vsel %vm224_vm0, %v340_v24, 0.0  ;;  %v271_v27 = vsel %vm224_vm0, %v259_v25, 0.0  ;;  %v355_v30 = vsel %vm224_vm0, %v341_v28, 0.0  ;;  %v274_v31 = vsel %vm224_vm0, %v260_v29, 0.0  ;;  %s1046_s12 = scalar_lea.vmem %s1466_s8, 1024  ;;  %p1053_p1 = scmp.lt.s32.totalorder %s1466_s8, %s1051_s14 }
  0x21   : > { %v342_v40 = vmul.f32 %v1280_v32, %v1280_v32  ;;  %v261_v41 = vmul.f32 %v1283_v33, %v1283_v33  ;;  %v343_v44 = vmul.f32 %v1290_v36, %v1290_v36  ;;  %v262_v45 = vmul.f32 %v1293_v37, %v1293_v37  ;;  %p1047_p12 = scmp.ne.s32.totalorder %s1466_s8, %s1046_s12  ;;  %p1054_p2 = scmp.lt.s32.totalorder %s1052_s21, %s1046_s12 }
  0x22   : > { %v324_v50 = vsel %vm224_vm0, %v1312_v48, 0.0  ;;  %v243_v51 = vsel %vm224_vm0, %v1315_v49, 0.0  ;;  %v327_v54 = vsel %vm224_vm0, %v1322_v52, 0.0  ;;  %v246_v55 = vsel %vm224_vm0, %v1325_v53, 0.0 }
  0x23   : > { %347 = vadd.xlane.f32.xlu1 %v346_v10  ;;  %266 = vadd.xlane.f32.xlu0 %v265_v11  ;;  %v358_v42 = vsel %vm224_vm0, %v342_v40, 0.0  ;;  %v277_v43 = vsel %vm224_vm0, %v261_v41, 0.0  ;;  %v361_v46 = vsel %vm224_vm0, %v343_v44, 0.0  ;;  %v280_v47 = vsel %vm224_vm0, %v262_v45, 0.0  ;;  %p1048_p13 = pnand %p1047_p12, %p1194_p4  ;;  %p1055_p3 = por %p1054_p2, %p1053_p1 }
  0x24   : > { %v344_v56 = vmul.f32 %v1312_v48, %v1312_v48  ;;  %v263_v57 = vmul.f32 %v1315_v49, %v1315_v49  ;;  %v345_v62 = vmul.f32 %v1322_v52, %v1322_v52  ;;  %v264_v63 = vmul.f32 %v1325_v53, %v1325_v53 }
  0x25   : > { %p1049_p0 = pneg %p1048_p13 }
  0x26   : > { %v364_v60 = vsel %vm224_vm0, %v344_v56, 0.0  ;;  %v283_v61 = vsel %vm224_vm0, %v263_v57, 0.0  ;;  %v367_v3 = vsel %vm224_vm0, %v345_v62, 0.0  ;;  %v286_v4 = vsel %vm224_vm0, %v264_v63, 0.0  ;;  %v1362_v63 = vld [vmem:[%s1517_s1 + $0x1] ss:$0 sm:$0xff] }
  0x27   : > { %350 = vadd.xlane.f32.xlu1 %v349_v14  ;;  %269 = vadd.xlane.f32.xlu0 %v268_v15  ;;  %p1056_p5 = pnand %p1055_p3, %p1049_p0 }
  0x2b   : > { %313 = vadd.xlane.f32.xlu1 %v312_v18  ;;  %232 = vadd.xlane.f32.xlu0 %v231_v19 }
  0x2f   : > { %316 = vadd.xlane.f32.xlu1 %v315_v22  ;;  %235 = vadd.xlane.f32.xlu0 %v234_v23 }
  0x33   : > { %353 = vadd.xlane.f32.xlu1 %v352_v26  ;;  %272 = vadd.xlane.f32.xlu0 %v271_v27 }
  0x37   : > { %356 = vadd.xlane.f32.xlu1 %v355_v30  ;;  %275 = vadd.xlane.f32.xlu0 %v274_v31 }
  0x3b   : > { %319 = vadd.xlane.f32.xlu1 %v318_v34  ;;  %238 = vadd.xlane.f32.xlu0 %v237_v35 }
  0x3f   : > { %322 = vadd.xlane.f32.xlu1 %v321_v38  ;;  %241 = vadd.xlane.f32.xlu0 %v240_v39 }
  0x43   : > { %359 = vadd.xlane.f32.xlu1 %v358_v42  ;;  %278 = vadd.xlane.f32.xlu0 %v277_v43 }
  0x47   : > { %362 = vadd.xlane.f32.xlu1 %v361_v46  ;;  %281 = vadd.xlane.f32.xlu0 %v280_v47 }
  0x4b   : > { %325 = vadd.xlane.f32.xlu1 %v324_v50  ;;  %244 = vadd.xlane.f32.xlu0 %v243_v51 }
  0x4f   : > { %328 = vadd.xlane.f32.xlu1 %v327_v54  ;;  %247 = vadd.xlane.f32.xlu0 %v246_v55 }
  0x53   : > { %365 = vadd.xlane.f32.xlu1 %v364_v60  ;;  %284 = vadd.xlane.f32.xlu0 %v283_v61 }
  0x57   : > { %368 = vadd.xlane.f32.xlu1 %v367_v3  ;;  %287 = vadd.xlane.f32.xlu0 %v286_v4 }
  0xa8   : > { %v230_v6 = vpop.xlane.xlu1 %229  ;;  %v227_v7 = vpop.xlane.xlu0 %226 }
  0xac   : > { %v311_v8 = vpop.xlane.xlu1 %310  ;;  %v308_v9 = vpop.xlane.xlu0 %307 }
  0xad   : > { %v330_v10 = vadd.f32 %v308_v9, %v227_v7  ;;  %v331_v11 = vadd.f32 %v311_v8, %v230_v6 }
  0xaf   : > { %v378_v12 = vmul.f32 0.0625, %v330_v10  ;;  %v379_v18 = vmul.f32 0.0625, %v331_v11  ;;  %v1374_v11 = vld [vmem:[%s1518_s2 + $0x1] ss:$0 sm:$0xff] }
  0xb0   : > { %v348_v13 = vpop.xlane.xlu1 %347  ;;  %v267_v14 = vpop.xlane.xlu0 %266 }
  0xb1   : > { %v370_v15 = vadd.f32 %v348_v13, %v267_v14  ;;  %v394_v19 = vmul.f32 %v378_v12, %v378_v12  ;;  %v395_v27 = vmul.f32 %v379_v18, %v379_v18  ;;  %v436_v57 = vsub.f32 %v1219_v1, %v378_v12  ;;  %v1367_v1 = vld [vmem:[%s1517_s1] ss:$0 sm:$0xff] }
  0xb2   : > { %v479_v58 = vsub.f32 %v1229_v5, %v378_v12  ;;  %v437_v7 = vsub.f32 %v1216_v0, %v379_v18  ;;  %v480_v8 = vsub.f32 %v1222_v2, %v379_v18 }
  0xb3   : > { %v386_v22 = vmul.f32 0.0625, %v370_v15 }
  0xb4   : > { %v351_v23 = vpop.xlane.xlu1 %350  ;;  %v270_v24 = vpop.xlane.xlu0 %269 }
  0xb5   : > { %v371_v25 = vadd.f32 %v351_v23, %v270_v24  ;;  %v402_v26 = vsub.f32 %v386_v22, %v394_v19  ;;  %v1380_v19 = vld [vmem:[%s1518_s2] ss:$0 sm:$0xff] }
  0xb7   : > { %v387_v28 = vmul.f32 0.0625, %v371_v25  ;;  %v410_v29 = vmax.f32 %v402_v26, 0.0 }
  0xb8   : > { %v314_v30 = vpop.xlane.xlu1 %313  ;;  %v233_v31 = vpop.xlane.xlu0 %232 }
  0xb9   : > { %v403_v34 = vsub.f32 %v387_v28, %v395_v27  ;;  %v418_v35 = vadd.f32 1e-05, %v410_v29  ;;  %v332_v39 = vadd.f32 %v314_v30, %v233_v31 }
  0xbb   : > { %v411_v38 = vmax.f32 %v403_v34, 0.0  ;;  %1030 = vrsqrt.f32 %v418_v35  ;;  %v1349_v44 = vmul.f32 0.0625, %v332_v39 }
  0xbc   : > { %v317_v40 = vpop.xlane.xlu1 %316  ;;  %v236_v41 = vpop.xlane.xlu0 %235 }
  0xbd   : > { %v419_v42 = vadd.f32 1e-05, %v411_v38  ;;  %v333_v43 = vadd.f32 %v317_v40, %v236_v41  ;;  %v396_v51 = vmul.f32 %v1349_v44, %v1349_v44 }
  0xbf   : > { %1032 = vrsqrt.f32 %v419_v42  ;;  %v1351_v50 = vmul.f32 0.0625, %v333_v43 }
  0xc0   : > { %v354_v45 = vpop.xlane.xlu1 %353  ;;  %v273_v46 = vpop.xlane.xlu0 %272 }
  0xc1   : > { %v372_v47 = vadd.f32 %v354_v45, %v273_v46  ;;  %v397_v62 = vmul.f32 %v1351_v50, %v1351_v50  ;;  %v438_v46 = vsub.f32 %v1251_v17, %v1349_v44  ;;  %v482_v17 = vsub.f32 %v1258_v20, %v1351_v50 }
  0xc3   : > { %v388_v54 = vmul.f32 0.0625, %v372_v47  ;;  %v481_v47 = vsub.f32 %v1248_v16, %v1349_v44 }
  0xc4   : > { %v357_v55 = vpop.xlane.xlu1 %356  ;;  %v276_v56 = vpop.xlane.xlu0 %275 }
  0xc5   : > { %v404_v59 = vsub.f32 %v388_v54, %v396_v51  ;;  %v373_v60 = vadd.f32 %v357_v55, %v276_v56  ;;  %v1031_v61 = vpop.eup %1030 }
  0xc6   : > { %v487_v6 = vmul.f32 %v1031_v61, %v479_v58  ;;  %v444_v5 = vmul.f32 %v1031_v61, %v436_v57 }
  0xc7   : > { %v412_v3 = vmax.f32 %v404_v59, 0.0  ;;  %v389_v4 = vmul.f32 0.0625, %v373_v60 }
  0xc8   : > { %v320_v9 = vpop.xlane.xlu1 %319  ;;  %v239_v10 = vpop.xlane.xlu0 %238  ;;  %v499_v15 = vmul.f32 %v1362_v63, %v487_v6  ;;  %v456_v0 = vmul.f32 %v1367_v1, %v444_v5 }
  0xc9   : > { %v1033_v12 = vpop.eup %1032  ;;  %v420_v13 = vadd.f32 1e-05, %v412_v3  ;;  %v405_v14 = vsub.f32 %v389_v4, %v397_v62  ;;  %v334_v23 = vadd.f32 %v320_v9, %v239_v10  ;;  %v439_v3 = vsub.f32 %v1261_v21, %v1351_v50 }
  0xca   : > { %v488_v2 = vmul.f32 %v1033_v12, %v480_v8  ;;  %v445_v18 = vmul.f32 %v1033_v12, %v437_v7  ;;  %v511_v24 = vadd.f32 %v1374_v11, %v499_v15  ;;  %v468_v26 = vadd.f32 %v1380_v19, %v456_v0 }
  0xcb   : > { %1034 = vrsqrt.f32 %v420_v13  ;;  %v413_v22 = vmax.f32 %v405_v14, 0.0  ;;  %v1391_v35 = vmul.f32 0.0625, %v334_v23 }
  0xcc   : > { %v323_v25 = vpop.xlane.xlu1 %322  ;;  %v242_v27 = vpop.xlane.xlu0 %241  ;;  %v500_v28 = vmul.f32 %v1362_v63, %v488_v2  ;;  %v457_v29 = vmul.f32 %v1367_v1, %v445_v18  ;;  %939 = vmatprep.mubr.msk.f32.mxu1 %vm224_vm0, %v511_v24  ;;  %953 = vmatprep.mubr.msk.f32.mxu0 %vm224_vm0, %v468_v26 }
  0xcd   : > { %v421_v30 = vadd.f32 1e-05, %v413_v22  ;;  %v335_v38 = vadd.f32 %v323_v25, %v242_v27  ;;  %v398_v43 = vmul.f32 %v1391_v35, %v1391_v35 }
  0xce   : > { %v512_v31 = vadd.f32 %v1374_v11, %v500_v28  ;;  %v469_v34 = vadd.f32 %v1380_v19, %v457_v29 }
  0xcf   : > { %1036 = vrsqrt.f32 %v421_v30  ;;  %v1395_v42 = vmul.f32 0.0625, %v335_v38 }
  0xd0   : > { %v360_v39 = vpop.xlane.xlu1 %359  ;;  %940 = vmatmul.mubr.msk.f32.vlgmr.msra.gmra.mrb[0].mxu1 %vm224_vm0, %v512_v31  ;;  %954 = vmatmul.mubr.msk.f32.vlgmr.msra.gmra.mrb[0].mxu0 %vm224_vm0, %v469_v34  ;;  %v279_v40 = vpop.xlane.xlu0 %278  ;;  %v440_v31 = vsub.f32 %v1283_v33, %v1391_v35  ;;  %v483_v34 = vsub.f32 %v1280_v32, %v1391_v35 }
  0xd1   : > { %v374_v41 = vadd.f32 %v360_v39, %v279_v40  ;;  %v399_v61 = vmul.f32 %v1395_v42, %v1395_v42 }
  0xd3   : > { %v390_v45 = vmul.f32 0.0625, %v374_v41 }
  0xd4   : > { %v363_v51 = vpop.xlane.xlu1 %362  ;;  %v282_v54 = vpop.xlane.xlu0 %281 }
  0xd5   : > { %v1035_v55 = vpop.eup %1034  ;;  %v406_v56 = vsub.f32 %v390_v45, %v398_v43  ;;  %v375_v57 = vadd.f32 %v363_v51, %v282_v54 }
  0xd6   : > { %v489_v58 = vmul.f32 %v1035_v55, %v481_v47  ;;  %v446_v59 = vmul.f32 %v1035_v55, %v438_v46  ;;  %v441_v55 = vsub.f32 %v1293_v37, %v1395_v42 }
  0xd7   : > { %v414_v60 = vmax.f32 %v406_v56, 0.0  ;;  %v391_v62 = vmul.f32 0.0625, %v375_v57  ;;  %v484_v56 = vsub.f32 %v1290_v36, %v1395_v42 }
  0xd8   : > { %v326_v4 = vpop.xlane.xlu1 %325  ;;  %v245_v16 = vpop.xlane.xlu0 %244  ;;  %v501_v44 = vmul.f32 %v1362_v63, %v489_v58  ;;  %v458_v6 = vmul.f32 %v1367_v1, %v446_v59 }
  0xd9   : > { %v1037_v5 = vpop.eup %1036  ;;  %v422_v7 = vadd.f32 1e-05, %v414_v60  ;;  %v407_v8 = vsub.f32 %v391_v62, %v399_v61  ;;  %v336_v14 = vadd.f32 %v326_v4, %v245_v16 }
  0xda   : > { %v513_v9 = vadd.f32 %v1374_v11, %v501_v44  ;;  %v470_v10 = vadd.f32 %v1380_v19, %v458_v6  ;;  %v490_v12 = vmul.f32 %v1037_v5, %v482_v17  ;;  %v447_v13 = vmul.f32 %v1037_v5, %v439_v3 }
  0xdb   : > { %1038 = vrsqrt.f32 %v422_v7  ;;  %v415_v21 = vmax.f32 %v407_v8, 0.0  ;;  %v384_v23 = vmul.f32 0.0625, %v336_v14 }
  0xdc   : > { %v329_v15 = vpop.xlane.xlu1 %328  ;;  %942 = vmatprep.mubr.msk.f32.mxu1 %vm224_vm0, %v513_v9  ;;  %956 = vmatprep.mubr.msk.f32.mxu0 %vm224_vm0, %v470_v10  ;;  %v248_v20 = vpop.xlane.xlu0 %247  ;;  %v502_v50 = vmul.f32 %v1362_v63, %v490_v12  ;;  %v459_v0 = vmul.f32 %v1367_v1, %v447_v13 }
  0xdd   : > { %v423_v2 = vadd.f32 1e-05, %v415_v21  ;;  %v337_v24 = vadd.f32 %v329_v15, %v248_v20  ;;  %v400_v29 = vmul.f32 %v384_v23, %v384_v23  ;;  %v442_v16 = vsub.f32 %v1315_v49, %v384_v23 }
  0xde   : > { %v514_v18 = vadd.f32 %v1374_v11, %v502_v50  ;;  %v471_v22 = vadd.f32 %v1380_v19, %v459_v0  ;;  %v485_v44 = vsub.f32 %v1312_v48, %v384_v23 }
  0xdf   : > { %1040 = vrsqrt.f32 %v423_v2  ;;  %v385_v28 = vmul.f32 0.0625, %v337_v24 }
  0xe0   : > { %v366_v25 = vpop.xlane.xlu1 %365  ;;  %943 = vmatmul.mubr.msk.f32.gmra.mrb[2].mxu1 %vm224_vm0, %v514_v18  ;;  %957 = vmatmul.mubr.msk.f32.gmra.mrb[2].mxu0 %vm224_vm0, %v471_v22  ;;  %v285_v26 = vpop.xlane.xlu0 %284 }
  0xe1   : > { %v376_v27 = vadd.f32 %v366_v25, %v285_v26  ;;  %v401_v51 = vmul.f32 %v385_v28, %v385_v28  ;;  %v443_v8 = vsub.f32 %v1325_v53, %v385_v28  ;;  %v486_v9 = vsub.f32 %v1322_v52, %v385_v28 }
  0xe3   : > { %v392_v30 = vmul.f32 0.0625, %v376_v27 }
  0xe4   : > { %v369_v38 = vpop.xlane.xlu1 %368  ;;  %v288_v39 = vpop.xlane.xlu0 %287 }
  0xe5   : > { %v1039_v40 = vpop.eup %1038  ;;  %v408_v41 = vsub.f32 %v392_v30, %v400_v29  ;;  %v377_v43 = vadd.f32 %v369_v38, %v288_v39 }
  0xe6   : > { %v491_v45 = vmul.f32 %v1039_v40, %v483_v34  ;;  %v448_v46 = vmul.f32 %v1039_v40, %v440_v31 }
  0xe7   : > { %v416_v47 = vmax.f32 %v408_v41, 0.0  ;;  %v393_v54 = vmul.f32 0.0625, %v377_v43 }
  0xe8   : > { %v503_v33 = vmul.f32 %v1362_v63, %v491_v45  ;;  %v460_v32 = vmul.f32 %v1367_v1, %v448_v46 }
  0xe9   : > { %v1041_v35 = vpop.eup %1040  ;;  %v424_v57 = vadd.f32 1e-05, %v416_v47  ;;  %v409_v58 = vsub.f32 %v393_v54, %v401_v51 }
  0xea   : > { %v515_v59 = vadd.f32 %v1374_v11, %v503_v33  ;;  %v472_v60 = vadd.f32 %v1380_v19, %v460_v32  ;;  %v492_v61 = vmul.f32 %v1041_v35, %v484_v56  ;;  %v449_v62 = vmul.f32 %v1041_v35, %v441_v55 }
  0xeb   : > { %1042 = vrsqrt.f32 %v424_v57  ;;  %v417_v3 = vmax.f32 %v409_v58, 0.0 }
  0xec   : > { %945 = vmatprep.mubr.msk.f32.mxu1 %vm224_vm0, %v515_v59  ;;  %959 = vmatprep.mubr.msk.f32.mxu0 %vm224_vm0, %v472_v60  ;;  %v504_v36 = vmul.f32 %v1362_v63, %v492_v61  ;;  %v461_v37 = vmul.f32 %v1367_v1, %v449_v62 }
  0xed   : > { %v425_v42 = vadd.f32 1e-05, %v417_v3 }
  0xee   : > { %v516_v17 = vadd.f32 %v1374_v11, %v504_v36  ;;  %v473_v4 = vadd.f32 %v1380_v19, %v461_v37 }
  0xef   : > { %1044 = vrsqrt.f32 %v425_v42 }
  0xf0   : > { %946 = vmatmul.mubr.msk.f32.gmra.mrb[4].mxu1 %vm224_vm0, %v516_v17  ;;  %960 = vmatmul.mubr.msk.f32.gmra.mrb[4].mxu0 %vm224_vm0, %v473_v4 }
  0xf5   : > { %v1043_v6 = vpop.eup %1042 }
  0xf6   : > { %v493_v5 = vmul.f32 %v1043_v6, %v485_v44  ;;  %v450_v7 = vmul.f32 %v1043_v6, %v442_v16 }
  0xf8   : > { %v505_v10 = vmul.f32 %v1362_v63, %v493_v5  ;;  %v462_v12 = vmul.f32 %v1367_v1, %v450_v7 }
  0xf9   : > { %v1045_v13 = vpop.eup %1044 }
  0xfa   : > { %v517_v21 = vadd.f32 %v1374_v11, %v505_v10  ;;  %v474_v49 = vadd.f32 %v1380_v19, %v462_v12  ;;  %v494_v14 = vmul.f32 %v1045_v13, %v486_v9  ;;  %v451_v48 = vmul.f32 %v1045_v13, %v443_v8 }
  0xfc   : > { %948 = vmatprep.mubr.msk.f32.mxu1 %vm224_vm0, %v517_v21  ;;  %962 = vmatprep.mubr.msk.f32.mxu0 %vm224_vm0, %v474_v49  ;;  %v506_v53 = vmul.f32 %v1362_v63, %v494_v14  ;;  %v463_v52 = vmul.f32 %v1367_v1, %v451_v48 }
  0xfe   : > { %v518_v15 = vadd.f32 %v1374_v11, %v506_v53  ;;  %v475_v20 = vadd.f32 %v1380_v19, %v463_v52 }
 0x100   : > { %949 = vmatmul.mubr.msk.f32.gmra.mrb[6].mxu1 %vm224_vm0, %v518_v15  ;;  %963 = vmatmul.mubr.msk.f32.gmra.mrb[6].mxu0 %vm224_vm0, %v475_v20 }
 0x1a3   : > { %v941_v50 = vpop.f32.mrb[0].mxu1  ;;  %v955_v0 = vpop.f32.mrb[0].mxu0 }
 0x1a4   : > { %v746_v2 = vadd.f32 %v955_v0, %v941_v50  ;;  %v611_v18 = vpop.f32.mrb[1].mxu1  ;;  %v740_v22 = vpop.f32.mrb[1].mxu0 }
 0x1a5   : > { %v741_v23 = vadd.f32 %v740_v22, %v611_v18 }
 0x1a6   : > { %780 = vst [vmem:[%s207_s6 + $0x8] sm:$0xff] %v746_v2 }
 0x1a7   : > { %779 = vst [vmem:[%s207_s6] sm:$0xff] %v741_v23 }
 0x1b3   : > { %v944_v63 = vpop.f32.mrb[2].mxu1  ;;  %v958_v1 = vpop.f32.mrb[2].mxu0 }
 0x1b4   : > { %v756_v11 = vadd.f32 %v958_v1, %v944_v63  ;;  %v621_v19 = vpop.f32.mrb[3].mxu1  ;;  %v750_v24 = vpop.f32.mrb[3].mxu0 }
 0x1b5   : > { %v751_v25 = vadd.f32 %v750_v24, %v621_v19 }
 0x1b6   : > { %782 = vst [vmem:[%s207_s6 + $0x18] sm:$0xff] %v756_v11 }
 0x1b7   : > { %781 = vst [vmem:[%s207_s6 + $0x10] sm:$0xff] %v751_v25 }
 0x1c3   : > { %v947_v26 = vpop.f32.mrb[4].mxu1  ;;  %v961_v27 = vpop.f32.mrb[4].mxu0 }
 0x1c4   : > { %v766_v28 = vadd.f32 %v961_v27, %v947_v26  ;;  %v631_v29 = vpop.f32.mrb[5].mxu1  ;;  %v760_v30 = vpop.f32.mrb[5].mxu0 }
 0x1c5   : > { %v761_v31 = vadd.f32 %v760_v30, %v631_v29 }
 0x1c6   : > { %784 = vst [vmem:[%s207_s6 + $0x28] sm:$0xff] %v766_v28 }
 0x1c7   : > { %783 = vst [vmem:[%s207_s6 + $0x20] sm:$0xff] %v761_v31 }
 0x1d3   : > { %v950_v34 = vpop.f32.mrb[6].mxu1  ;;  %v964_v38 = vpop.f32.mrb[6].mxu0 }
 0x1d4   : > { %v776_v39 = vadd.f32 %v964_v38, %v950_v34  ;;  %v641_v40 = vpop.f32.mrb[7].mxu1  ;;  %v770_v41 = vpop.f32.mrb[7].mxu0 }
 0x1d5   : > { %v771_v43 = vadd.f32 %v770_v41, %v641_v40 }
 0x1d6   : > { %786 = vst [vmem:[%s207_s6 + $0x38] sm:$0xff] %v776_v39 }
 0x1d7   : > { %785 = vst [vmem:[%s207_s6 + $0x30] sm:$0xff] %v771_v43 }
 0x1d8   : > { %1059 = shalt.err (!%p1056_p5)
}
 0x1d9   : > { %s1060_s22 = scalar_lea.hbm %s1464_s11, 1024  ;;  %s1064_s29 = scalar_lea.hbm %s1520_s4, 2048 }
 0x1da   : > { %p1061_p6 = scmp.ne.s32.totalorder %s1464_s11, %s1060_s22  ;;  %p1065_p10 = scmp.lt.u32.totalorder %s1464_s11, %s1520_s4 }
 0x1db   : > { %p1066_p11 = scmp.lt.u32.totalorder %s1064_s29, %s1060_s22  ;;  %p1068_p13 = scmp.lt.u32.totalorder %s1060_s22, %s1464_s11 }
 0x1dc   : > { %p1062_p7 = pnand %p1061_p6, %p1194_p4 }
 0x1dd   : > { %p1067_p12 = por %p1066_p11, %p1065_p10 }
 0x1de   : > { %p1063_p9 = pneg %p1062_p7 }
 0x1df   : > { %p1069_p0 = por %p1068_p13, %p1067_p12 }
 0x1e1   : > { %p1070_p1 = pnand %p1069_p0, %p1063_p9 }
 0x1e3   : > { %1073 = shalt.err (!%p1070_p1)
}
 0x1e4   : > { %s1127_s6 = smov 128   ;;  %s1128_s7 = smov 8  }
 0x1e5   : > { %973 = dma.vmem_to_hbm [thread:$0]  (%p1194_p4), %s1466_s8, 1024, %s1464_s11, %s1470_s18, %s1127_s6, %s1127_s6, %s1128_s7  }
 0x1e6 PF: > { %p979_p2 = scmp.ge.s32.totalorder %s1124_s20, 2  ;;  %s817_s9 = sand.u32 1, %s1104_s15  }
 0x1e7   : > { %s818_s10 = scalar_lea.sflag [#allocation3], %s817_s9 }
 0x1e8   : > { %p976_p3 = pnand %p979_p2, %p1201_p8 }
 0x1ea   : > { %1099 = dma.done.wait (!%p976_p3), %s818_s10, 1024  }
 0x1eb   : > { %1101 = vsyncadd (!%p976_p3), %s818_s10, 4294966272  ;;  %s17_s20 = sadd.s32 1, %s1124_s20   ;;  %s1523_s15 = smov %s1108_s16 }
 0x1ec   : > { %p14_p5 = scmp.ge.s32.totalorder %s17_s20, 4   ;;  %s1524_s16 = smov %s1112_s17 }
 0x1ed   : > { %s1525_s17 = smov %s1207_s28  ;;  %s1526_s18 = smov %s1120_s19 }
 0x1ee   : > { %s1527_s19 = smov %s1529_s23  ;;  %16 = sbr.rel (!%p14_p5) target bundleno = 4 (0x4), region = 73 }
 0x1f5   :  { %823 = vsyncpa [#allocation3], 1 }
 0x1f6   :  { %825 = vsyncpa [#allocation3 + $0x1], 1 }

// kernel: tpu_custom_call.1
= control target key start
LH: loop header
LB: loop body
LE: loop exit
PB: predicated region body
PF: predicated region fallthrough
CT: control target
= control target key end

     0   :  { %9 = vsyncpa [#allocation3], 0  ;;  %s1516_s0 = inlined_call_operand.vmem [shape: f32[16,2,8,8], index: 0, kind: input, shape index: {}]   ;;  %s1517_s1 = inlined_call_operand.vmem [shape: f32[2,8], index: 1, kind: input, shape index: {}]   ;;  %s1518_s2 = inlined_call_operand.vmem [shape: f32[2,8], index: 2, kind: input, shape index: {}]   ;;  %s1519_s3 = inlined_call_operand.vmem [shape: f32[2,8,128], index: 3, kind: input, shape index: {}]   ;;  %s1520_s4 = inlined_call_operand.hbm [shape: f32[128,128], index: 4, kind: output, shape index: {}]  }
   0x1   :  { %11 = vsyncpa [#allocation3 + $0x1], 0  ;;  %s1154_s15 = smov 0   ;;  %s1156_s16 = smov 0  }
   0x2   :  { %s1158_s17 = smov 0   ;;  %s1160_s18 = smov 0  }
   0x3   :  { %s1162_s19 = smov 0   ;;  %s1164_s20 = smov 0  }
   0x4 LB: > { %s874_s21 = sadd.s32 4294967295, %s1124_s20   ;;  %s875_s22 = sadd.s32 4294967294, %s1124_s20   ;;  %s1124_s20 = sphi %s1164_s20, %s17_s20   ;;  %s1120_s19 = sphi %s1162_s19, %s1527_s19   ;;  %s1116_s18 = sphi %s1160_s18, %s1526_s18   ;;  %s1112_s17 = sphi %s1158_s17, %s1525_s17   ;;  %s1108_s16 = sphi %s1156_s16, %s1524_s16   ;;  %s1104_s15 = sphi %s1154_s15, %s1523_s15  }
   0x5   : > { %s29_s23 = sadd.s32 1, %s1120_s19  ;;  %s127_s24 = sadd.s32 1, %s1112_s17 }
   0x6   : > { %p31_p0 = scmp.ge.s32.totalorder %s29_s23, 2  ;;  %p137_p1 = scmp.ne.s32.totalorder %s1112_s17, %s1108_s16 }
   0x7   : > { %p138_p2 = scmp.eq.s32.totalorder %s874_s21, 1  ;;  %p143_p3 = scmp.ne.s32.totalorder %s1108_s16, %s1104_s15 }
   0x8   : > { %s1529_s23 = smov (%p31_p0, %s29_s23), 0  ;;  %p144_p5 = scmp.eq.s32.totalorder %s875_s22, 1 }
   0x9   : > { %p1194_p4 = por %p138_p2, %p137_p1  ;;  %s122_s26 = ssub.s32 %s1120_s19, %s1529_s23 }
   0xa   : > { %p878_p6 = scmp.ge.s32.totalorder %s1124_s20, 1  ;;  %p125_p7 = scmp.eq.s32.totalorder %s122_s26, 0 }
   0xb   : > { %p1201_p8 = por %p144_p5, %p143_p3  ;;  %p181_p9 = scmp.lt.s32.totalorder %s1124_s20, 3 }
   0xc   : > { %s1207_s28 = scalar_select %p125_p7, %s1112_s17, %s127_s24  }
   0xd   : > { %p182_p10 = pnand %p878_p6, %p181_p9 }
   0xe   : > { %s880_s29 = sshll.u32 (!%p182_p10), %s1116_s18, 3  ;;  %vm224_vm0 = vcmask (!%p182_p10), 64512   ;;  %v895_v58 = vld [vmem:[%s1519_s3 + $0x8] sm:$0xff] (!%p182_p10)  ;;  %v476_v59 = vld [vmem:[%s1519_s3] sm:$0xff] (!%p182_p10)  ;;  %s1126_s13 = smov (!%p182_p10), [#allocation2]  }
   0xf   : > { %185 = sbr.rel (%p182_p10) target bundleno = 486 (0x1e6), region = 36  ;;  %p209_p11 = scmp.lt.s32.totalorder (!%p182_p10), %s880_s29, 15  ;;  %937 = vmatprep.subr.mxu1 (!%p182_p10), %v895_v58  ;;  %951 = vmatprep.subr.mxu0 (!%p182_p10), %v476_v59 }
  0x10   : > { %938 = vmatpush3.msra.mxu1 (!%p182_p10), %v895_v58  ;;  %952 = vmatpush3.msra.mxu0 (!%p182_p10), %v476_v59  ;;  %s1050_s14 = sshll.u32 (!%p182_p10), %s1126_s13, 4  ;;  %s1051_s14 = int_to_ptr.vmem [resolvable:$false] %s1050_s14 }
  0x11   : > { %s1052_s21 = scalar_lea.vmem (!%p182_p10), %s1051_s14, 2048 }
  0x16   : > { %s1531_s29 = smov (!%p209_p11, %s880_s29), 15 }
  0x17   : > { %s917_s30 = sshll.u32 %s1531_s29, 4 }
  0x18   : > { %s1213_s7 = scalar_lea.vmem %s1516_s0, %s917_s30  ;;  %s205_s30 = sand.u32 1, %s1108_s16  }
  0x19   : > { %v1216_v0 = vld [vmem:[%s1213_s7 + $0x10] sm:$0xff]  ;;  %v1219_v1 = vld [vmem:[%s1213_s7] sm:$0xff]  ;;  %v1222_v2 = vld [vmem:[%s1213_s7 + $0x18] sm:$0xff]  ;;  %s879_s5 = sshll.u32 %s205_s30, 6 }
  0x1a   : > { %v228_v3 = vsel %vm224_vm0, %v1216_v0, 0.0  ;;  %v225_v4 = vsel %vm224_vm0, %v1219_v1, 0.0  ;;  %v1229_v5 = vld [vmem:[%s1213_s7 + $0x8] sm:$0xff]  ;;  %v309_v6 = vsel %vm224_vm0, %v1222_v2, 0.0  ;;  %v257_v9 = vmul.f32 %v1219_v1, %v1219_v1  ;;  %v1251_v17 = vld [vmem:[%s1213_s7 + $0x20] sm:$0xff]  ;;  %v1258_v20 = vld [vmem:[%s1213_s7 + $0x38] sm:$0xff] }
  0x1b   : > { %229 = vadd.xlane.f32.xlu1 %v228_v3  ;;  %226 = vadd.xlane.f32.xlu0 %v225_v4  ;;  %v306_v7 = vsel %vm224_vm0, %v1229_v5, 0.0  ;;  %v338_v8 = vmul.f32 %v1229_v5, %v1229_v5  ;;  %v339_v12 = vmul.f32 %v1222_v2, %v1222_v2  ;;  %v258_v13 = vmul.f32 %v1216_v0, %v1216_v0  ;;  %v1248_v16 = vld [vmem:[%s1213_s7 + $0x28] sm:$0xff]  ;;  %v1261_v21 = vld [vmem:[%s1213_s7 + $0x30] sm:$0xff]  ;;  %v1283_v33 = vld [vmem:[%s1213_s7 + $0x40] sm:$0xff]  ;;  %s207_s6 = scalar_lea.vmem [#allocation2], %s879_s5 }
  0x1c   : > { %v265_v11 = vsel %vm224_vm0, %v257_v9, 0.0  ;;  %v312_v18 = vsel %vm224_vm0, %v1248_v16, 0.0  ;;  %v231_v19 = vsel %vm224_vm0, %v1251_v17, 0.0  ;;  %v315_v22 = vsel %vm224_vm0, %v1258_v20, 0.0  ;;  %v1280_v32 = vld [vmem:[%s1213_s7 + $0x48] sm:$0xff]  ;;  %v1290_v36 = vld [vmem:[%s1213_s7 + $0x58] sm:$0xff] }
  0x1d   : > { %v346_v10 = vsel %vm224_vm0, %v338_v8, 0.0  ;;  %v349_v14 = vsel %vm224_vm0, %v339_v12, 0.0  ;;  %v268_v15 = vsel %vm224_vm0, %v258_v13, 0.0  ;;  %v234_v23 = vsel %vm224_vm0, %v1261_v21, 0.0  ;;  %v1293_v37 = vld [vmem:[%s1213_s7 + $0x50] sm:$0xff]  ;;  %v1312_v48 = vld [vmem:[%s1213_s7 + $0x68] sm:$0xff] }
  0x1e   : > { %v340_v24 = vmul.f32 %v1248_v16, %v1248_v16  ;;  %v259_v25 = vmul.f32 %v1251_v17, %v1251_v17  ;;  %v341_v28 = vmul.f32 %v1258_v20, %v1258_v20  ;;  %v260_v29 = vmul.f32 %v1261_v21, %v1261_v21  ;;  %v1315_v49 = vld [vmem:[%s1213_s7 + $0x60] sm:$0xff]  ;;  %v1322_v52 = vld [vmem:[%s1213_s7 + $0x78] sm:$0xff]  ;;  %v1325_v53 = vld [vmem:[%s1213_s7 + $0x70] sm:$0xff]  ;;  %s918_s7 = sshll.u32 %s1116_s18, 10  ;;  %s802_s8 = sshll.u32 %s207_s6, 4  ;;  %s1466_s8 = int_to_ptr.vmem [resolvable:$true] %s802_s8 }
  0x1f   : > { %310 = vadd.xlane.f32.xlu1 %v309_v6  ;;  %307 = vadd.xlane.f32.xlu0 %v306_v7  ;;  %v318_v34 = vsel %vm224_vm0, %v1280_v32, 0.0  ;;  %v237_v35 = vsel %vm224_vm0, %v1283_v33, 0.0  ;;  %v321_v38 = vsel %vm224_vm0, %v1290_v36, 0.0  ;;  %v240_v39 = vsel %vm224_vm0, %v1293_v37, 0.0  ;;  %s1464_s11 = scalar_lea.hbm %s1520_s4, %s918_s7  ;;  %s1470_s18 = scalar_lea.sflag [#allocation3], %s205_s30 }
  0x20   : > { %v352_v26 = vsel %vm224_vm0, %v340_v24, 0.0  ;;  %v271_v27 = vsel %vm224_vm0, %v259_v25, 0.0  ;;  %v355_v30 = vsel %vm224_vm0, %v341_v28, 0.0  ;;  %v274_v31 = vsel %vm224_vm0, %v260_v29, 0.0  ;;  %s1046_s12 = scalar_lea.vmem %s1466_s8, 1024  ;;  %p1053_p1 = scmp.lt.s32.totalorder %s1466_s8, %s1051_s14 }
  0x21   : > { %v342_v40 = vmul.f32 %v1280_v32, %v1280_v32  ;;  %v261_v41 = vmul.f32 %v1283_v33, %v1283_v33  ;;  %v343_v44 = vmul.f32 %v1290_v36, %v1290_v36  ;;  %v262_v45 = vmul.f32 %v1293_v37, %v1293_v37  ;;  %p1047_p12 = scmp.ne.s32.totalorder %s1466_s8, %s1046_s12  ;;  %p1054_p2 = scmp.lt.s32.totalorder %s1052_s21, %s1046_s12 }
  0x22   : > { %v324_v50 = vsel %vm224_vm0, %v1312_v48, 0.0  ;;  %v243_v51 = vsel %vm224_vm0, %v1315_v49, 0.0  ;;  %v327_v54 = vsel %vm224_vm0, %v1322_v52, 0.0  ;;  %v246_v55 = vsel %vm224_vm0, %v1325_v53, 0.0 }
  0x23   : > { %347 = vadd.xlane.f32.xlu1 %v346_v10  ;;  %266 = vadd.xlane.f32.xlu0 %v265_v11  ;;  %v358_v42 = vsel %vm224_vm0, %v342_v40, 0.0  ;;  %v277_v43 = vsel %vm224_vm0, %v261_v41, 0.0  ;;  %v361_v46 = vsel %vm224_vm0, %v343_v44, 0.0  ;;  %v280_v47 = vsel %vm224_vm0, %v262_v45, 0.0  ;;  %p1048_p13 = pnand %p1047_p12, %p1194_p4  ;;  %p1055_p3 = por %p1054_p2, %p1053_p1 }
  0x24   : > { %v344_v56 = vmul.f32 %v1312_v48, %v1312_v48  ;;  %v263_v57 = vmul.f32 %v1315_v49, %v1315_v49  ;;  %v345_v62 = vmul.f32 %v1322_v52, %v1322_v52  ;;  %v264_v63 = vmul.f32 %v1325_v53, %v1325_v53 }
  0x25   : > { %p1049_p0 = pneg %p1048_p13 }
  0x26   : > { %v364_v60 = vsel %vm224_vm0, %v344_v56, 0.0  ;;  %v283_v61 = vsel %vm224_vm0, %v263_v57, 0.0  ;;  %v367_v3 = vsel %vm224_vm0, %v345_v62, 0.0  ;;  %v286_v4 = vsel %vm224_vm0, %v264_v63, 0.0  ;;  %v1362_v63 = vld [vmem:[%s1517_s1 + $0x1] ss:$0 sm:$0xff] }
  0x27   : > { %350 = vadd.xlane.f32.xlu1 %v349_v14  ;;  %269 = vadd.xlane.f32.xlu0 %v268_v15  ;;  %p1056_p5 = pnand %p1055_p3, %p1049_p0 }
  0x2b   : > { %313 = vadd.xlane.f32.xlu1 %v312_v18  ;;  %232 = vadd.xlane.f32.xlu0 %v231_v19 }
  0x2f   : > { %316 = vadd.xlane.f32.xlu1 %v315_v22  ;;  %235 = vadd.xlane.f32.xlu0 %v234_v23 }
  0x33   : > { %353 = vadd.xlane.f32.xlu1 %v352_v26  ;;  %272 = vadd.xlane.f32.xlu0 %v271_v27 }
  0x37   : > { %356 = vadd.xlane.f32.xlu1 %v355_v30  ;;  %275 = vadd.xlane.f32.xlu0 %v274_v31 }
  0x3b   : > { %319 = vadd.xlane.f32.xlu1 %v318_v34  ;;  %238 = vadd.xlane.f32.xlu0 %v237_v35 }
  0x3f   : > { %322 = vadd.xlane.f32.xlu1 %v321_v38  ;;  %241 = vadd.xlane.f32.xlu0 %v240_v39 }
  0x43   : > { %359 = vadd.xlane.f32.xlu1 %v358_v42  ;;  %278 = vadd.xlane.f32.xlu0 %v277_v43 }
  0x47   : > { %362 = vadd.xlane.f32.xlu1 %v361_v46  ;;  %281 = vadd.xlane.f32.xlu0 %v280_v47 }
  0x4b   : > { %325 = vadd.xlane.f32.xlu1 %v324_v50  ;;  %244 = vadd.xlane.f32.xlu0 %v243_v51 }
  0x4f   : > { %328 = vadd.xlane.f32.xlu1 %v327_v54  ;;  %247 = vadd.xlane.f32.xlu0 %v246_v55 }
  0x53   : > { %365 = vadd.xlane.f32.xlu1 %v364_v60  ;;  %284 = vadd.xlane.f32.xlu0 %v283_v61 }
  0x57   : > { %368 = vadd.xlane.f32.xlu1 %v367_v3  ;;  %287 = vadd.xlane.f32.xlu0 %v286_v4 }
  0xa8   : > { %v230_v6 = vpop.xlane.xlu1 %229  ;;  %v227_v7 = vpop.xlane.xlu0 %226 }
  0xac   : > { %v311_v8 = vpop.xlane.xlu1 %310  ;;  %v308_v9 = vpop.xlane.xlu0 %307 }
  0xad   : > { %v330_v10 = vadd.f32 %v308_v9, %v227_v7  ;;  %v331_v11 = vadd.f32 %v311_v8, %v230_v6 }
  0xaf   : > { %v378_v12 = vmul.f32 0.0625, %v330_v10  ;;  %v379_v18 = vmul.f32 0.0625, %v331_v11  ;;  %v1374_v11 = vld [vmem:[%s1518_s2 + $0x1] ss:$0 sm:$0xff] }
  0xb0   : > { %v348_v13 = vpop.xlane.xlu1 %347  ;;  %v267_v14 = vpop.xlane.xlu0 %266 }
  0xb1   : > { %v370_v15 = vadd.f32 %v348_v13, %v267_v14  ;;  %v394_v19 = vmul.f32 %v378_v12, %v378_v12  ;;  %v395_v27 = vmul.f32 %v379_v18, %v379_v18  ;;  %v436_v57 = vsub.f32 %v1219_v1, %v378_v12  ;;  %v1367_v1 = vld [vmem:[%s1517_s1] ss:$0 sm:$0xff] }
  0xb2   : > { %v479_v58 = vsub.f32 %v1229_v5, %v378_v12  ;;  %v437_v7 = vsub.f32 %v1216_v0, %v379_v18  ;;  %v480_v8 = vsub.f32 %v1222_v2, %v379_v18 }
  0xb3   : > { %v386_v22 = vmul.f32 0.0625, %v370_v15 }
  0xb4   : > { %v351_v23 = vpop.xlane.xlu1 %350  ;;  %v270_v24 = vpop.xlane.xlu0 %269 }
  0xb5   : > { %v371_v25 = vadd.f32 %v351_v23, %v270_v24  ;;  %v402_v26 = vsub.f32 %v386_v22, %v394_v19  ;;  %v1380_v19 = vld [vmem:[%s1518_s2] ss:$0 sm:$0xff] }
  0xb7   : > { %v387_v28 = vmul.f32 0.0625, %v371_v25  ;;  %v410_v29 = vmax.f32 %v402_v26, 0.0 }
  0xb8   : > { %v314_v30 = vpop.xlane.xlu1 %313  ;;  %v233_v31 = vpop.xlane.xlu0 %232 }
  0xb9   : > { %v403_v34 = vsub.f32 %v387_v28, %v395_v27  ;;  %v418_v35 = vadd.f32 1e-05, %v410_v29  ;;  %v332_v39 = vadd.f32 %v314_v30, %v233_v31 }
  0xbb   : > { %v411_v38 = vmax.f32 %v403_v34, 0.0  ;;  %1030 = vrsqrt.f32 %v418_v35  ;;  %v1349_v44 = vmul.f32 0.0625, %v332_v39 }
  0xbc   : > { %v317_v40 = vpop.xlane.xlu1 %316  ;;  %v236_v41 = vpop.xlane.xlu0 %235 }
  0xbd   : > { %v419_v42 = vadd.f32 1e-05, %v411_v38  ;;  %v333_v43 = vadd.f32 %v317_v40, %v236_v41  ;;  %v396_v51 = vmul.f32 %v1349_v44, %v1349_v44 }
  0xbf   : > { %1032 = vrsqrt.f32 %v419_v42  ;;  %v1351_v50 = vmul.f32 0.0625, %v333_v43 }
  0xc0   : > { %v354_v45 = vpop.xlane.xlu1 %353  ;;  %v273_v46 = vpop.xlane.xlu0 %272 }
  0xc1   : > { %v372_v47 = vadd.f32 %v354_v45, %v273_v46  ;;  %v397_v62 = vmul.f32 %v1351_v50, %v1351_v50  ;;  %v438_v46 = vsub.f32 %v1251_v17, %v1349_v44  ;;  %v482_v17 = vsub.f32 %v1258_v20, %v1351_v50 }
  0xc3   : > { %v388_v54 = vmul.f32 0.0625, %v372_v47  ;;  %v481_v47 = vsub.f32 %v1248_v16, %v1349_v44 }
  0xc4   : > { %v357_v55 = vpop.xlane.xlu1 %356  ;;  %v276_v56 = vpop.xlane.xlu0 %275 }
  0xc5   : > { %v404_v59 = vsub.f32 %v388_v54, %v396_v51  ;;  %v373_v60 = vadd.f32 %v357_v55, %v276_v56  ;;  %v1031_v61 = vpop.eup %1030 }
  0xc6   : > { %v487_v6 = vmul.f32 %v1031_v61, %v479_v58  ;;  %v444_v5 = vmul.f32 %v1031_v61, %v436_v57 }
  0xc7   : > { %v412_v3 = vmax.f32 %v404_v59, 0.0  ;;  %v389_v4 = vmul.f32 0.0625, %v373_v60 }
  0xc8   : > { %v320_v9 = vpop.xlane.xlu1 %319  ;;  %v239_v10 = vpop.xlane.xlu0 %238  ;;  %v499_v15 = vmul.f32 %v1362_v63, %v487_v6  ;;  %v456_v0 = vmul.f32 %v1367_v1, %v444_v5 }
  0xc9   : > { %v1033_v12 = vpop.eup %1032  ;;  %v420_v13 = vadd.f32 1e-05, %v412_v3  ;;  %v405_v14 = vsub.f32 %v389_v4, %v397_v62  ;;  %v334_v23 = vadd.f32 %v320_v9, %v239_v10  ;;  %v439_v3 = vsub.f32 %v1261_v21, %v1351_v50 }
  0xca   : > { %v488_v2 = vmul.f32 %v1033_v12, %v480_v8  ;;  %v445_v18 = vmul.f32 %v1033_v12, %v437_v7  ;;  %v511_v24 = vadd.f32 %v1374_v11, %v499_v15  ;;  %v468_v26 = vadd.f32 %v1380_v19, %v456_v0 }
  0xcb   : > { %1034 = vrsqrt.f32 %v420_v13  ;;  %v413_v22 = vmax.f32 %v405_v14, 0.0  ;;  %v1391_v35 = vmul.f32 0.0625, %v334_v23 }
  0xcc   : > { %v323_v25 = vpop.xlane.xlu1 %322  ;;  %v242_v27 = vpop.xlane.xlu0 %241  ;;  %v500_v28 = vmul.f32 %v1362_v63, %v488_v2  ;;  %v457_v29 = vmul.f32 %v1367_v1, %v445_v18  ;;  %939 = vmatprep.mubr.msk.f32.mxu1 %vm224_vm0, %v511_v24  ;;  %953 = vmatprep.mubr.msk.f32.mxu0 %vm224_vm0, %v468_v26 }
  0xcd   : > { %v421_v30 = vadd.f32 1e-05, %v413_v22  ;;  %v335_v38 = vadd.f32 %v323_v25, %v242_v27  ;;  %v398_v43 = vmul.f32 %v1391_v35, %v1391_v35 }
  0xce   : > { %v512_v31 = vadd.f32 %v1374_v11, %v500_v28  ;;  %v469_v34 = vadd.f32 %v1380_v19, %v457_v29 }
  0xcf   : > { %1036 = vrsqrt.f32 %v421_v30  ;;  %v1395_v42 = vmul.f32 0.0625, %v335_v38 }
  0xd0   : > { %v360_v39 = vpop.xlane.xlu1 %359  ;;  %940 = vmatmul.mubr.msk.f32.vlgmr.msra.gmra.mrb[0].mxu1 %vm224_vm0, %v512_v31  ;;  %954 = vmatmul.mubr.msk.f32.vlgmr.msra.gmra.mrb[0].mxu0 %vm224_vm0, %v469_v34  ;;  %v279_v40 = vpop.xlane.xlu0 %278  ;;  %v440_v31 = vsub.f32 %v1283_v33, %v1391_v35  ;;  %v483_v34 = vsub.f32 %v1280_v32, %v1391_v35 }
  0xd1   : > { %v374_v41 = vadd.f32 %v360_v39, %v279_v40  ;;  %v399_v61 = vmul.f32 %v1395_v42, %v1395_v42 }
  0xd3   : > { %v390_v45 = vmul.f32 0.0625, %v374_v41 }
  0xd4   : > { %v363_v51 = vpop.xlane.xlu1 %362  ;;  %v282_v54 = vpop.xlane.xlu0 %281 }
  0xd5   : > { %v1035_v55 = vpop.eup %1034  ;;  %v406_v56 = vsub.f32 %v390_v45, %v398_v43  ;;  %v375_v57 = vadd.f32 %v363_v51, %v282_v54 }
  0xd6   : > { %v489_v58 = vmul.f32 %v1035_v55, %v481_v47  ;;  %v446_v59 = vmul.f32 %v1035_v55, %v438_v46  ;;  %v441_v55 = vsub.f32 %v1293_v37, %v1395_v42 }
  0xd7   : > { %v414_v60 = vmax.f32 %v406_v56, 0.0  ;;  %v391_v62 = vmul.f32 0.0625, %v375_v57  ;;  %v484_v56 = vsub.f32 %v1290_v36, %v1395_v42 }
  0xd8   : > { %v326_v4 = vpop.xlane.xlu1 %325  ;;  %v245_v16 = vpop.xlane.xlu0 %244  ;;  %v501_v44 = vmul.f32 %v1362_v63, %v489_v58  ;;  %v458_v6 = vmul.f32 %v1367_v1, %v446_v59 }
  0xd9   : > { %v1037_v5 = vpop.eup %1036  ;;  %v422_v7 = vadd.f32 1e-05, %v414_v60  ;;  %v407_v8 = vsub.f32 %v391_v62, %v399_v61  ;;  %v336_v14 = vadd.f32 %v326_v4, %v245_v16 }
  0xda   : > { %v513_v9 = vadd.f32 %v1374_v11, %v501_v44  ;;  %v470_v10 = vadd.f32 %v1380_v19, %v458_v6  ;;  %v490_v12 = vmul.f32 %v1037_v5, %v482_v17  ;;  %v447_v13 = vmul.f32 %v1037_v5, %v439_v3 }
  0xdb   : > { %1038 = vrsqrt.f32 %v422_v7  ;;  %v415_v21 = vmax.f32 %v407_v8, 0.0  ;;  %v384_v23 = vmul.f32 0.0625, %v336_v14 }
  0xdc   : > { %v329_v15 = vpop.xlane.xlu1 %328  ;;  %942 = vmatprep.mubr.msk.f32.mxu1 %vm224_vm0, %v513_v9  ;;  %956 = vmatprep.mubr.msk.f32.mxu0 %vm224_vm0, %v470_v10  ;;  %v248_v20 = vpop.xlane.xlu0 %247  ;;  %v502_v50 = vmul.f32 %v1362_v63, %v490_v12  ;;  %v459_v0 = vmul.f32 %v1367_v1, %v447_v13 }
  0xdd   : > { %v423_v2 = vadd.f32 1e-05, %v415_v21  ;;  %v337_v24 = vadd.f32 %v329_v15, %v248_v20  ;;  %v400_v29 = vmul.f32 %v384_v23, %v384_v23  ;;  %v442_v16 = vsub.f32 %v1315_v49, %v384_v23 }
  0xde   : > { %v514_v18 = vadd.f32 %v1374_v11, %v502_v50  ;;  %v471_v22 = vadd.f32 %v1380_v19, %v459_v0  ;;  %v485_v44 = vsub.f32 %v1312_v48, %v384_v23 }
  0xdf   : > { %1040 = vrsqrt.f32 %v423_v2  ;;  %v385_v28 = vmul.f32 0.0625, %v337_v24 }
  0xe0   : > { %v366_v25 = vpop.xlane.xlu1 %365  ;;  %943 = vmatmul.mubr.msk.f32.gmra.mrb[2].mxu1 %vm224_vm0, %v514_v18  ;;  %957 = vmatmul.mubr.msk.f32.gmra.mrb[2].mxu0 %vm224_vm0, %v471_v22  ;;  %v285_v26 = vpop.xlane.xlu0 %284 }
  0xe1   : > { %v376_v27 = vadd.f32 %v366_v25, %v285_v26  ;;  %v401_v51 = vmul.f32 %v385_v28, %v385_v28  ;;  %v443_v8 = vsub.f32 %v1325_v53, %v385_v28  ;;  %v486_v9 = vsub.f32 %v1322_v52, %v385_v28 }
  0xe3   : > { %v392_v30 = vmul.f32 0.0625, %v376_v27 }
  0xe4   : > { %v369_v38 = vpop.xlane.xlu1 %368  ;;  %v288_v39 = vpop.xlane.xlu0 %287 }
  0xe5   : > { %v1039_v40 = vpop.eup %1038  ;;  %v408_v41 = vsub.f32 %v392_v30, %v400_v29  ;;  %v377_v43 = vadd.f32 %v369_v38, %v288_v39 }
  0xe6   : > { %v491_v45 = vmul.f32 %v1039_v40, %v483_v34  ;;  %v448_v46 = vmul.f32 %v1039_v40, %v440_v31 }
  0xe7   : > { %v416_v47 = vmax.f32 %v408_v41, 0.0  ;;  %v393_v54 = vmul.f32 0.0625, %v377_v43 }
  0xe8   : > { %v503_v33 = vmul.f32 %v1362_v63, %v491_v45  ;;  %v460_v32 = vmul.f32 %v1367_v1, %v448_v46 }
  0xe9   : > { %v1041_v35 = vpop.eup %1040  ;;  %v424_v57 = vadd.f32 1e-05, %v416_v47  ;;  %v409_v58 = vsub.f32 %v393_v54, %v401_v51 }
  0xea   : > { %v515_v59 = vadd.f32 %v1374_v11, %v503_v33  ;;  %v472_v60 = vadd.f32 %v1380_v19, %v460_v32  ;;  %v492_v61 = vmul.f32 %v1041_v35, %v484_v56  ;;  %v449_v62 = vmul.f32 %v1041_v35, %v441_v55 }
  0xeb   : > { %1042 = vrsqrt.f32 %v424_v57  ;;  %v417_v3 = vmax.f32 %v409_v58, 0.0 }
  0xec   : > { %945 = vmatprep.mubr.msk.f32.mxu1 %vm224_vm0, %v515_v59  ;;  %959 = vmatprep.mubr.msk.f32.mxu0 %vm224_vm0, %v472_v60  ;;  %v504_v36 = vmul.f32 %v1362_v63, %v492_v61  ;;  %v461_v37 = vmul.f32 %v1367_v1, %v449_v62 }
  0xed   : > { %v425_v42 = vadd.f32 1e-05, %v417_v3 }
  0xee   : > { %v516_v17 = vadd.f32 %v1374_v11, %v504_v36  ;;  %v473_v4 = vadd.f32 %v1380_v19, %v461_v37 }
  0xef   : > { %1044 = vrsqrt.f32 %v425_v42 }
  0xf0   : > { %946 = vmatmul.mubr.msk.f32.gmra.mrb[4].mxu1 %vm224_vm0, %v516_v17  ;;  %960 = vmatmul.mubr.msk.f32.gmra.mrb[4].mxu0 %vm224_vm0, %v473_v4 }
  0xf5   : > { %v1043_v6 = vpop.eup %1042 }
  0xf6   : > { %v493_v5 = vmul.f32 %v1043_v6, %v485_v44  ;;  %v450_v7 = vmul.f32 %v1043_v6, %v442_v16 }
  0xf8   : > { %v505_v10 = vmul.f32 %v1362_v63, %v493_v5  ;;  %v462_v12 = vmul.f32 %v1367_v1, %v450_v7 }
  0xf9   : > { %v1045_v13 = vpop.eup %1044 }
  0xfa   : > { %v517_v21 = vadd.f32 %v1374_v11, %v505_v10  ;;  %v474_v49 = vadd.f32 %v1380_v19, %v462_v12  ;;  %v494_v14 = vmul.f32 %v1045_v13, %v486_v9  ;;  %v451_v48 = vmul.f32 %v1045_v13, %v443_v8 }
  0xfc   : > { %948 = vmatprep.mubr.msk.f32.mxu1 %vm224_vm0, %v517_v21  ;;  %962 = vmatprep.mubr.msk.f32.mxu0 %vm224_vm0, %v474_v49  ;;  %v506_v53 = vmul.f32 %v1362_v63, %v494_v14  ;;  %v463_v52 = vmul.f32 %v1367_v1, %v451_v48 }
  0xfe   : > { %v518_v15 = vadd.f32 %v1374_v11, %v506_v53  ;;  %v475_v20 = vadd.f32 %v1380_v19, %v463_v52 }
 0x100   : > { %949 = vmatmul.mubr.msk.f32.gmra.mrb[6].mxu1 %vm224_vm0, %v518_v15  ;;  %963 = vmatmul.mubr.msk.f32.gmra.mrb[6].mxu0 %vm224_vm0, %v475_v20 }
 0x1a3   : > { %v941_v50 = vpop.f32.mrb[0].mxu1  ;;  %v955_v0 = vpop.f32.mrb[0].mxu0 }
 0x1a4   : > { %v746_v2 = vadd.f32 %v955_v0, %v941_v50  ;;  %v611_v18 = vpop.f32.mrb[1].mxu1  ;;  %v740_v22 = vpop.f32.mrb[1].mxu0 }
 0x1a5   : > { %v741_v23 = vadd.f32 %v740_v22, %v611_v18 }
 0x1a6   : > { %780 = vst [vmem:[%s207_s6 + $0x8] sm:$0xff] %v746_v2 }
 0x1a7   : > { %779 = vst [vmem:[%s207_s6] sm:$0xff] %v741_v23 }
 0x1b3   : > { %v944_v63 = vpop.f32.mrb[2].mxu1  ;;  %v958_v1 = vpop.f32.mrb[2].mxu0 }
 0x1b4   : > { %v756_v11 = vadd.f32 %v958_v1, %v944_v63  ;;  %v621_v19 = vpop.f32.mrb[3].mxu1  ;;  %v750_v24 = vpop.f32.mrb[3].mxu0 }
 0x1b5   : > { %v751_v25 = vadd.f32 %v750_v24, %v621_v19 }
 0x1b6   : > { %782 = vst [vmem:[%s207_s6 + $0x18] sm:$0xff] %v756_v11 }
 0x1b7   : > { %781 = vst [vmem:[%s207_s6 + $0x10] sm:$0xff] %v751_v25 }
 0x1c3   : > { %v947_v26 = vpop.f32.mrb[4].mxu1  ;;  %v961_v27 = vpop.f32.mrb[4].mxu0 }
 0x1c4   : > { %v766_v28 = vadd.f32 %v961_v27, %v947_v26  ;;  %v631_v29 = vpop.f32.mrb[5].mxu1  ;;  %v760_v30 = vpop.f32.mrb[5].mxu0 }
 0x1c5   : > { %v761_v31 = vadd.f32 %v760_v30, %v631_v29 }
 0x1c6   : > { %784 = vst [vmem:[%s207_s6 + $0x28] sm:$0xff] %v766_v28 }
 0x1c7   : > { %783 = vst [vmem:[%s207_s6 + $0x20] sm:$0xff] %v761_v31 }
 0x1d3   : > { %v950_v34 = vpop.f32.mrb[6].mxu1  ;;  %v964_v38 = vpop.f32.mrb[6].mxu0 }
 0x1d4   : > { %v776_v39 = vadd.f32 %v964_v38, %v950_v34  ;;  %v641_v40 = vpop.f32.mrb[7].mxu1  ;;  %v770_v41 = vpop.f32.mrb[7].mxu0 }
 0x1d5   : > { %v771_v43 = vadd.f32 %v770_v41, %v641_v40 }
 0x1d6   : > { %786 = vst [vmem:[%s207_s6 + $0x38] sm:$0xff] %v776_v39 }
 0x1d7   : > { %785 = vst [vmem:[%s207_s6 + $0x30] sm:$0xff] %v771_v43 }
 0x1d8   : > { %1059 = shalt.err (!%p1056_p5)
}
 0x1d9   : > { %s1060_s22 = scalar_lea.hbm %s1464_s11, 1024  ;;  %s1064_s29 = scalar_lea.hbm %s1520_s4, 2048 }
 0x1da   : > { %p1061_p6 = scmp.ne.s32.totalorder %s1464_s11, %s1060_s22  ;;  %p1065_p10 = scmp.lt.u32.totalorder %s1464_s11, %s1520_s4 }
 0x1db   : > { %p1066_p11 = scmp.lt.u32.totalorder %s1064_s29, %s1060_s22  ;;  %p1068_p13 = scmp.lt.u32.totalorder %s1060_s22, %s1464_s11 }
 0x1dc   : > { %p1062_p7 = pnand %p1061_p6, %p1194_p4 }
 0x1dd   : > { %p1067_p12 = por %p1066_p11, %p1065_p10 }
 0x1de   : > { %p1063_p9 = pneg %p1062_p7 }
 0x1df   : > { %p1069_p0 = por %p1068_p13, %p1067_p12 }
 0x1e1   : > { %p1070_p1 = pnand %p1069_p0, %p1063_p9 }
 0x1e3   : > { %1073 = shalt.err (!%p1070_p1)
}
 0x1e4   : > { %s1127_s6 = smov 128   ;;  %s1128_s7 = smov 8  }
 0x1e5   : > { %973 = dma.vmem_to_hbm [thread:$0]  (%p1194_p4), %s1466_s8, 1024, %s1464_s11, %s1470_s18, %s1127_s6, %s1127_s6, %s1128_s7  }
 0x1e6 PF: > { %p979_p2 = scmp.ge.s32.totalorder %s1124_s20, 2  ;;  %s817_s9 = sand.u32 1, %s1104_s15  }
 0x1e7   : > { %s818_s10 = scalar_lea.sflag [#allocation3], %s817_s9 }
 0x1e8   : > { %p976_p3 = pnand %p979_p2, %p1201_p8 }
 0x1ea   : > { %1099 = dma.done.wait (!%p976_p3), %s818_s10, 1024  }
 0x1eb   : > { %1101 = vsyncadd (!%p976_p3), %s818_s10, 4294966272  ;;  %s17_s20 = sadd.s32 1, %s1124_s20   ;;  %s1523_s15 = smov %s1108_s16 }
 0x1ec   : > { %p14_p5 = scmp.ge.s32.totalorder %s17_s20, 4   ;;  %s1524_s16 = smov %s1112_s17 }
 0x1ed   : > { %s1525_s17 = smov %s1207_s28  ;;  %s1526_s18 = smov %s1120_s19 }
 0x1ee   : > { %s1527_s19 = smov %s1529_s23  ;;  %16 = sbr.rel (!%p14_p5) target bundleno = 4 (0x4), region = 73 }
 0x1f5   :  { %823 = vsyncpa [#allocation3], 1 }
 0x1f6   :  { %825 = vsyncpa [#allocation3 + $0x1], 1 }

</bundles_post_ra>
